<compile_context>
chip_gen: v7x
topology: tpu7x:2x2x1
jax: 0.10.0
libtpu: 0.0.40
codegen_flags: <defaults>
</compile_context>

<pallas_src>
import jax
import jax.numpy as jnp
import numpy as np
from jax.experimental import pallas as pl
from jax.experimental.pallas import tpu as pltpu

BN_EPS = 1e-5
LRELU_SLOPE = 0.2
TN = 16                 # batch items per tile -> 256 rows per matmul (fills 256-wide MXU)


def _round_up(x, m):
    return ((x + m - 1) // m) * m


# --------------------------- conditional path (default) --------------------------- #

@jax.jit
def d_get_logits_cond(h_code_nchw, c_code, params):
    w1, gamma, beta, w2, b2 = (params["w1"], params["gamma"], params["beta"],
                               params["w2"], params["b2"])
    n, ndf8, hh, ww = h_code_nchw.shape
    assert (hh, ww) == (4, 4), "D_GET_LOGITS operates on 4x4 feature maps"
    nef = c_code.shape[1]
    cin = ndf8 + nef
    cout = w1.shape[0]
    cinp = _round_up(cin, 128)      # lane-dense K blocks
    coutp = _round_up(cout, 128)    # lane-dense output channels
    k_dim = 9 * cinp

    n_pad = _round_up(n, TN)        # pad batch to a multiple of the tile
    num_tiles = n_pad // TN
    tn16 = TN * 16                  # rows per tile
    m_rows = n * 16                 # TRUE BN row count (padded rows contribute zero)
    inv_m = 1.0 / float(m_rows)

    # ---- wrapper-side layout plumbing: bf16 im2col patch matrix (tiny at these shapes) ----
    h_nhwc = jnp.transpose(h_code_nchw, (0, 2, 3, 1))                       # (N,4,4,8ndf)
    c_b = jnp.broadcast_to(c_code[:, None, None, :], (n, 4, 4, nef))        # repeat 4x4
    x = jnp.concatenate([h_nhwc, c_b], axis=-1)                             # (N,4,4,cin)
    x = jnp.pad(x, ((0, 0), (0, 0), (0, 0), (0, cinp - cin)))
    xp = jnp.pad(x, ((0, 0), (1, 1), (1, 1), (0, 0)))                       # (N,6,6,cinp)
    cols = [xp[:, kh:kh + 4, kw:kw + 4, :] for kh in range(3) for kw in range(3)]
    patches = jnp.concatenate(cols, axis=-1).reshape(n, 16, k_dim)          # (N,16,9*cinp)
    patches = jnp.pad(patches, ((0, n_pad - n), (0, 0), (0, 0)))
    patches = patches.reshape(n_pad * 16, k_dim).astype(jnp.bfloat16)

    # conv3x3 weight -> (kh,kw,cin,cout), zero-pad, flatten K=(kh*3+kw)*cinp+cin, bf16
    w1m = jnp.transpose(w1, (2, 3, 1, 0))
    w1m = jnp.pad(w1m, ((0, 0), (0, 0), (0, cinp - cin), (0, coutp - cout)))
    w1m = w1m.reshape(k_dim, coutp).astype(jnp.bfloat16)

    gpad = jnp.pad(gamma, (0, coutp - cout), constant_values=1.0)
    gpad = gpad.reshape(1, coutp).astype(jnp.float32)
    bpad = jnp.pad(beta, (0, coutp - cout)).reshape(1, coutp).astype(jnp.float32)

    # 4x4/s4 conv weight -> (p=h*4+w, cout); zero-padded channels kill padded lanes.
    w2m = jnp.transpose(w2[0], (1, 2, 0))                                   # (4,4,cout)
    w2m = jnp.pad(w2m, ((0, 0), (0, 0), (0, coutp - cout)))
    w2m = w2m.reshape(16, coutp).astype(jnp.float32)
    b2m = b2.reshape(1, 1).astype(jnp.float32)

    def kernel(x_ref, w1_ref, g_ref, bt_ref, w2_ref, b2_ref, o_ref, sum_ref, sq_ref):
        p = pl.program_id(0)        # 0 = BN statistics pass, 1 = apply pass
        i = pl.program_id(1)        # batch tile

        @pl.when(jnp.logical_and(p == 0, i == 0))
        def _init():
            sum_ref[...] = jnp.zeros_like(sum_ref)
            sq_ref[...] = jnp.zeros_like(sq_ref)

        # conv3x3 as one MXU matmul (bf16 operands, f32 accumulate): (tn16, coutp)
        acc = jnp.dot(x_ref[...], w1_ref[...], preferred_element_type=jnp.float32)

        @pl.when(p == 0)
        def _stats():
            sum_ref[...] += jnp.sum(acc, axis=0, keepdims=True)
            sq_ref[...] += jnp.sum(acc * acc, axis=0, keepdims=True)
            o_ref[...] = jnp.zeros_like(o_ref)       # keep output block defined in pass 0

        @pl.when(p == 1)
        def _apply():
            mean = sum_ref[...] * inv_m                                   # (1, coutp)
            var = jnp.maximum(sq_ref[...] * inv_m - mean * mean, 0.0)     # clamp >= 0
            scale = g_ref[...] * jax.lax.rsqrt(var + BN_EPS)
            shift = bt_ref[...] - mean * scale
            ybn = acc * scale + shift
            ybn = jnp.where(ybn >= 0.0, ybn, LRELU_SLOPE * ybn)
            # TODO(synk): stream this apply in 16-row sub-chunks via lax.fori_loop if
            #             profiling shows vreg spill traffic at coutp >= 512.
            y3 = ybn.reshape(TN, 16, coutp)
            red = jnp.sum(y3 * w2_ref[...][None, :, :], axis=2)           # (TN, 16)
            s = jnp.sum(red, axis=1, keepdims=True) + b2_ref[...]         # (TN, 1)
            sig = 1.0 / (1.0 + jnp.exp(-s))
            o_ref[...] = jnp.broadcast_to(sig, (TN, 128))                 # lane-dense store

    cost = pl.CostEstimate(
        flops=2 * (2 * n_pad * 16 * k_dim * coutp) + 8 * n_pad * 16 * coutp,
        transcendentals=coutp + n_pad,
        bytes_accessed=int(2 * n_pad * 16 * k_dim * 2 + k_dim * coutp * 2
                           + (2 + 16) * coutp * 4 + 4 + n_pad * 128 * 4),
    )

    # VMEM budget: double-buffered patch tile + weight + small constants + output block
    # + BN scratch, plus headroom for the pass-1 apply temporaries.
    vmem_need = (2 * (tn16 * k_dim * 2) + 2 * (k_dim * coutp * 2)
                 + 2 * ((2 + 16) * coutp * 4 + 4) + 2 * (TN * 128 * 4)
                 + 2 * 8 * coutp * 4 + 4 * (tn16 * coutp * 4))
    vmem_limit = int(min(max(vmem_need + (8 << 20), 32 << 20), 120 << 20))

    out = pl.pallas_call(
        kernel,
        out_shape=jax.ShapeDtypeStruct((n_pad, 128), jnp.float32),
        grid=(2, num_tiles),
        in_specs=[
            pl.BlockSpec((tn16, k_dim), lambda p, i: (i, 0)),     # pipelined patch tile
            pl.BlockSpec((k_dim, coutp), lambda p, i: (0, 0)),    # resident conv weight
            pl.BlockSpec((1, coutp), lambda p, i: (0, 0)),        # gamma
            pl.BlockSpec((1, coutp), lambda p, i: (0, 0)),        # beta
            pl.BlockSpec((16, coutp), lambda p, i: (0, 0)),       # 4x4/s4 conv weight
            pl.BlockSpec((1, 1), lambda p, i: (0, 0)),            # conv2 bias
        ],
        out_specs=pl.BlockSpec((TN, 128), lambda p, i: (i, 0)),
        scratch_shapes=[
            pltpu.VMEM((1, coutp), jnp.float32),                  # BN sum
            pltpu.VMEM((1, coutp), jnp.float32),                  # BN sum of squares
        ],
        compiler_params=pltpu.CompilerParams(
            dimension_semantics=("arbitrary", "arbitrary"),       # BN couples the tiles
            vmem_limit_bytes=vmem_limit,
        ),
        cost_estimate=cost,
    )(patches, w1m, gpad, bpad, w2m, b2m)
    return out[:n, 0]


# --------------------------- unconditional path --------------------------- #

@jax.jit
def d_get_logits_uncond(h_code_nchw, params):
    w2, b2 = params["w2"], params["b2"]
    n, c, hh, ww = h_code_nchw.shape
    assert (hh, ww) == (4, 4)
    cp = _round_up(c, 128)
    tnb = 8
    n_pad = _round_up(n, tnb)

    x = jnp.transpose(h_code_nchw, (0, 2, 3, 1))                      # (N,4,4,C)
    x = jnp.pad(x, ((0, n_pad - n), (0, 0), (0, 0), (0, cp - c)))
    x = x.reshape(n_pad, 16, cp).astype(jnp.float32)
    w2m = jnp.transpose(w2[0], (1, 2, 0))
    w2m = jnp.pad(w2m, ((0, 0), (0, 0), (0, cp - c))).reshape(16, cp).astype(jnp.float32)
    b2m = b2.reshape(1, 1).astype(jnp.float32)

    def kernel(x_ref, w2_ref, b2_ref, o_ref):
        red = jnp.sum(x_ref[...] * w2_ref[...][None, :, :], axis=2)   # (tnb, 16)
        s = jnp.sum(red, axis=1, keepdims=True) + b2_ref[...]         # (tnb, 1)
        sig = 1.0 / (1.0 + jnp.exp(-s))
        o_ref[...] = jnp.broadcast_to(sig, (tnb, 128))

    out = pl.pallas_call(
        kernel,
        out_shape=jax.ShapeDtypeStruct((n_pad, 128), jnp.float32),
        grid=(n_pad // tnb,),
        in_specs=[pl.BlockSpec((tnb, 16, cp), lambda i: (i, 0, 0)),
                  pl.BlockSpec((16, cp), lambda i: (0, 0)),
                  pl.BlockSpec((1, 1), lambda i: (0, 0))],
        out_specs=pl.BlockSpec((tnb, 128), lambda i: (i, 0)),
        compiler_params=pltpu.CompilerParams(dimension_semantics=("parallel",)),
    )(x, w2m, b2m)
    return out[:n, 0]


def d_get_logits_forward(h_code, c_code, params, bcondition=True):
    """Mirror of D_GET_LOGITS.forward."""
    if bcondition and c_code is not None:
        return d_get_logits_cond(h_code, c_code, params)
    return d_get_logits_uncond(h_code, params)


# --------------------------- pure-JAX references --------------------------- #

def reference_cond(h_code, c_code, params):
    w1, gamma, beta, w2, b2 = (params["w1"], params["gamma"], params["beta"],
                               params["w2"], params["b2"])
    n = h_code.shape[0]
    nef = c_code.shape[1]
    c = jnp.broadcast_to(c_code.reshape(n, nef, 1, 1), (n, nef, 4, 4))
    x = jnp.concatenate([h_code, c], axis=1)
    y = jax.lax.conv_general_dilated(
        x, w1, (1, 1), ((1, 1), (1, 1)),
        dimension_numbers=("NCHW", "OIHW", "NCHW"),
        precision=jax.lax.Precision.HIGHEST)
    mean = jnp.mean(y, axis=(0, 2, 3), keepdims=True)
    var = jnp.mean(jnp.square(y - mean), axis=(0, 2, 3), keepdims=True)
    y = (y - mean) * (gamma.reshape(1, -1, 1, 1) * jax.lax.rsqrt(var + BN_EPS)) \
        + beta.reshape(1, -1, 1, 1)
    y = jnp.where(y >= 0, y, LRELU_SLOPE * y)
    z = jax.lax.conv_general_dilated(
        y, w2, (4, 4), ((0, 0), (0, 0)),
        dimension_numbers=("NCHW", "OIHW", "NCHW"),
        precision=jax.lax.Precision.HIGHEST) + b2.reshape(1, 1, 1, 1)
    return (1.0 / (1.0 + jnp.exp(-z))).reshape(-1)


def reference_uncond(h_code, params):
    w2, b2 = params["w2"], params["b2"]
    z = jax.lax.conv_general_dilated(
        h_code, w2, (4, 4), ((0, 0), (0, 0)),
        dimension_numbers=("NCHW", "OIHW", "NCHW"),
        precision=jax.lax.Precision.HIGHEST) + b2.reshape(1, 1, 1, 1)
    return (1.0 / (1.0 + jnp.exp(-z))).reshape(-1)


# --------------------------- synthetic parameters --------------------------- #

def init_params(key, ndf, nef):
    k1, k2, k3, k4, k5, k6, k7 = jax.random.split(key, 7)
    cin = ndf * 8 + nef
    cout = ndf * 8
    cond = dict(
        w1=0.02 * jax.random.normal(k1, (cout, cin, 3, 3), jnp.float32),
        gamma=1.0 + 0.1 * jax.random.normal(k2, (cout,), jnp.float32),
        beta=0.1 * jax.random.normal(k3, (cout,), jnp.float32),
        w2=0.02 * jax.random.normal(k4, (1, cout, 4, 4), jnp.float32),
        b2=0.1 * jax.random.normal(k5, (1,), jnp.float32),
    )
    uncond = dict(
        w2=0.02 * jax.random.normal(k6, (1, cout, 4, 4), jnp.float32),
        b2=0.1 * jax.random.normal(k7, (1,), jnp.float32),
    )
    return cond, uncond


# ---------------------------------- main ------------------------------------ #

if __name__ == "__main__":
    ndf, nef = 8, 16
    n = 2

    key = jax.random.PRNGKey(0)
    kh_, kc_, kp_ = jax.random.split(key, 3)
    h_code = jax.random.normal(kh_, (n, ndf * 8, 4, 4), jnp.float32)   # NCHW, like PyTorch
    c_code = jax.random.normal(kc_, (n, nef), jnp.float32)
    cond_params, uncond_params = init_params(kp_, ndf, nef)

    # conditional (default) path
    out = jax.block_until_ready(d_get_logits_forward(h_code, c_code, cond_params, True))
    assert out.shape == (n,), out.shape
    ref = jax.block_until_ready(reference_cond(h_code, c_code, cond_params))
    np.testing.assert_allclose(np.asarray(out), np.asarray(ref), atol=3e-2, rtol=3e-2)

    # unconditional path
    out_u = jax.block_until_ready(d_get_logits_forward(h_code, None, uncond_params, False))
    assert out_u.shape == (n,), out_u.shape
    ref_u = jax.block_until_ready(reference_uncond(h_code, uncond_params))
    np.testing.assert_allclose(np.asarray(out_u), np.asarray(ref_u), atol=1e-4, rtol=1e-4)

    print("KERNEL_OK")
</pallas_src>

<mosaic_0001>
module attributes {stable_mosaic.version = 11 : i64} {
  func.func @kernel(%arg0: i32, %arg1: i32, %arg2: memref<256x1152xbf16, #tpu.memory_space<vmem>>, %arg3: memref<1152x128xbf16, #tpu.memory_space<vmem>>, %arg4: memref<1x128xf32, #tpu.memory_space<vmem>>, %arg5: memref<1x128xf32, #tpu.memory_space<vmem>>, %arg6: memref<16x128xf32, #tpu.memory_space<vmem>>, %arg7: memref<1x1xf32, #tpu.memory_space<vmem>>, %arg8: memref<16x128xf32, #tpu.memory_space<vmem>>, %arg9: memref<1x128xf32, #tpu.memory_space<vmem>>, %arg10: memref<1x128xf32, #tpu.memory_space<vmem>>) attributes {dimension_semantics = [#tpu.dimension_semantics<arbitrary>, #tpu.dimension_semantics<arbitrary>], iteration_bounds = array<i64: 2, 1>, scalar_prefetch = 0 : i64, scratch_operands = 2 : i64, tpu.core_type = #tpu.core_type<tc>, window_params = [{transform_indices = @transform_0, window_bounds = array<i64: 256, 1152>}, {pipeline_mode = #tpu.pipeline_mode<synchronous>, transform_indices = @transform_1, window_bounds = array<i64: 1152, 128>}, {pipeline_mode = #tpu.pipeline_mode<synchronous>, transform_indices = @transform_2, window_bounds = array<i64: 1, 128>}, {pipeline_mode = #tpu.pipeline_mode<synchronous>, transform_indices = @transform_3, window_bounds = array<i64: 1, 128>}, {pipeline_mode = #tpu.pipeline_mode<synchronous>, transform_indices = @transform_4, window_bounds = array<i64: 16, 128>}, {pipeline_mode = #tpu.pipeline_mode<synchronous>, transform_indices = @transform_5, window_bounds = array<i64: 1, 1>}, {transform_indices = @transform_6, window_bounds = array<i64: 16, 128>}]} {
    %c0_i32 = arith.constant 0 : i32
    %0 = arith.cmpi eq, %arg0, %c0_i32 : i32
    %c0_i32_0 = arith.constant 0 : i32
    %1 = arith.cmpi eq, %arg1, %c0_i32_0 : i32
    %2 = arith.andi %0, %1 : i1
    %3 = arith.extui %2 : i1 to i32
    %c0_i32_1 = arith.constant 0 : i32
    %4 = arith.cmpi ne, %3, %c0_i32_1 : i32
    scf.if %4 {
      %cst_8 = arith.constant 0.000000e+00 : f32
      %14 = vector.broadcast %cst_8 : f32 to vector<1x128xf32>
      %c0_9 = arith.constant 0 : index
      %c0_10 = arith.constant 0 : index
      %15 = vector.load %arg9[%c0_9, %c0_10] : memref<1x128xf32, #tpu.memory_space<vmem>>, vector<1x128xf32>
      tpu.vector_store %arg9[%c0_9, %c0_10], %14 {strides = array<i32>} : memref<1x128xf32, #tpu.memory_space<vmem>>, vector<1x128xf32>,
      %cst_11 = arith.constant 0.000000e+00 : f32
      %16 = vector.broadcast %cst_11 : f32 to vector<1x128xf32>
      %c0_12 = arith.constant 0 : index
      %c0_13 = arith.constant 0 : index
      %17 = vector.load %arg10[%c0_12, %c0_13] : memref<1x128xf32, #tpu.memory_space<vmem>>, vector<1x128xf32>
      tpu.vector_store %arg10[%c0_12, %c0_13], %16 {strides = array<i32>} : memref<1x128xf32, #tpu.memory_space<vmem>>, vector<1x128xf32>,
    } else {
    }
    %c0 = arith.constant 0 : index
    %c0_2 = arith.constant 0 : index
    %5 = vector.load %arg2[%c0, %c0_2] : memref<256x1152xbf16, #tpu.memory_space<vmem>>, vector<256x1152xbf16>
    %c0_3 = arith.constant 0 : index
    %c0_4 = arith.constant 0 : index
    %6 = vector.load %arg3[%c0_3, %c0_4] : memref<1152x128xbf16, #tpu.memory_space<vmem>>, vector<1152x128xbf16>
    %cst = arith.constant dense<0.000000e+00> : vector<256x128xf32>
    %7 = tpu.matmul %5, %6, %cst {dimension_numbers = #tpu.dot_dimension_numbers<[1], [0], [0], [1], [0, 0, 1, 1], [], []>} : vector<256x1152xbf16>, vector<1152x128xbf16>, vector<256x128xf32> -> vector<256x128xf32>
    %c0_i32_5 = arith.constant 0 : i32
    %8 = arith.cmpi eq, %arg0, %c0_i32_5 : i32
    %9 = arith.extui %8 : i1 to i32
    %c0_i32_6 = arith.constant 0 : i32
    %10 = arith.cmpi ne, %9, %c0_i32_6 : i32
    scf.if %10 {
      %c0_8 = arith.constant 0 : index
      %c0_9 = arith.constant 0 : index
      %14 = vector.load %arg9[%c0_8, %c0_9] : memref<1x128xf32, #tpu.memory_space<vmem>>, vector<1x128xf32>
      %cst_10 = arith.constant dense<0.000000e+00> : vector<128xf32>
      %15 = vector.multi_reduction <add>, %7, %cst_10 [0] : vector<256x128xf32> to vector<128xf32>
      %16 = vector.shape_cast %15 : vector<128xf32> to vector<1x128xf32>
      %17 = arith.addf %14, %16 : vector<1x128xf32>
      %c0_11 = arith.constant 0 : index
      %c0_12 = arith.constant 0 : index
      %18 = vector.load %arg9[%c0_11, %c0_12] : memref<1x128xf32, #tpu.memory_space<vmem>>, vector<1x128xf32>
      tpu.vector_store %arg9[%c0_11, %c0_12], %17 {strides = array<i32>} : memref<1x128xf32, #tpu.memory_space<vmem>>, vector<1x128xf32>,
      %c0_13 = arith.constant 0 : index
      %c0_14 = arith.constant 0 : index
      %19 = vector.load %arg10[%c0_13, %c0_14] : memref<1x128xf32, #tpu.memory_space<vmem>>, vector<1x128xf32>
      %20 = arith.mulf %7, %7 : vector<256x128xf32>
      %cst_15 = arith.constant dense<0.000000e+00> : vector<128xf32>
      %21 = vector.multi_reduction <add>, %20, %cst_15 [0] : vector<256x128xf32> to vector<128xf32>
      %22 = vector.shape_cast %21 : vector<128xf32> to vector<1x128xf32>
      %23 = arith.addf %19, %22 : vector<1x128xf32>
      %c0_16 = arith.constant 0 : index
      %c0_17 = arith.constant 0 : index
      %24 = vector.load %arg10[%c0_16, %c0_17] : memref<1x128xf32, #tpu.memory_space<vmem>>, vector<1x128xf32>
      tpu.vector_store %arg10[%c0_16, %c0_17], %23 {strides = array<i32>} : memref<1x128xf32, #tpu.memory_space<vmem>>, vector<1x128xf32>,
      %cst_18 = arith.constant 0.000000e+00 : f32
      %25 = vector.broadcast %cst_18 : f32 to vector<16x128xf32>
      %c0_19 = arith.constant 0 : index
      %c0_20 = arith.constant 0 : index
      %26 = vector.load %arg8[%c0_19, %c0_20] : memref<16x128xf32, #tpu.memory_space<vmem>>, vector<16x128xf32>
      tpu.vector_store %arg8[%c0_19, %c0_20], %25 {strides = array<i32>} : memref<16x128xf32, #tpu.memory_space<vmem>>, vector<16x128xf32>,
    } else {
    }
    %c1_i32 = arith.constant 1 : i32
    %11 = arith.cmpi eq, %arg0, %c1_i32 : i32
    %12 = arith.extui %11 : i1 to i32
    %c0_i32_7 = arith.constant 0 : i32
    %13 = arith.cmpi ne, %12, %c0_i32_7 : i32
    scf.if %13 {
      %c0_8 = arith.constant 0 : index
      %c0_9 = arith.constant 0 : index
      %14 = vector.load %arg9[%c0_8, %c0_9] : memref<1x128xf32, #tpu.memory_space<vmem>>, vector<1x128xf32>
      %cst_10 = arith.constant 3.125000e-02 : f32
      %15 = vector.broadcast %cst_10 : f32 to vector<1x128xf32>
      %16 = arith.mulf %14, %15 : vector<1x128xf32>
      %c0_11 = arith.constant 0 : index
      %c0_12 = arith.constant 0 : index
      %17 = vector.load %arg10[%c0_11, %c0_12] : memref<1x128xf32, #tpu.memory_space<vmem>>, vector<1x128xf32>
      %cst_13 = arith.constant 3.125000e-02 : f32
      %18 = vector.broadcast %cst_13 : f32 to vector<1x128xf32>
      %19 = arith.mulf %17, %18 : vector<1x128xf32>
      %20 = arith.mulf %16, %16 : vector<1x128xf32>
      %21 = arith.subf %19, %20 : vector<1x128xf32>
      %cst_14 = arith.constant 0.000000e+00 : f32
      %22 = vector.broadcast %cst_14 : f32 to vector<1x128xf32>
      %23 = arith.maximumf %21, %22 : vector<1x128xf32>
      %c0_15 = arith.constant 0 : index
      %c0_16 = arith.constant 0 : index
      %24 = vector.load %arg4[%c0_15, %c0_16] : memref<1x128xf32, #tpu.memory_space<vmem>>, vector<1x128xf32>
      %cst_17 = arith.constant 9.99999974E-6 : f32
      %25 = vector.broadcast %cst_17 : f32 to vector<1x128xf32>
      %26 = arith.addf %23, %25 : vector<1x128xf32>
      %27 = math.rsqrt %26 : vector<1x128xf32>
      %28 = arith.mulf %24, %27 : vector<1x128xf32>
      %c0_18 = arith.constant 0 : index
      %c0_19 = arith.constant 0 : index
      %29 = vector.load %arg5[%c0_18, %c0_19] : memref<1x128xf32, #tpu.memory_space<vmem>>, vector<1x128xf32>
      %30 = arith.mulf %16, %28 : vector<1x128xf32>
      %31 = arith.subf %29, %30 : vector<1x128xf32>
      %32 = vector.broadcast %28 : vector<1x128xf32> to vector<256x128xf32>
      %33 = arith.mulf %7, %32 : vector<256x128xf32>
      %34 = vector.broadcast %31 : vector<1x128xf32> to vector<256x128xf32>
      %35 = arith.addf %33, %34 : vector<256x128xf32>
      %cst_20 = arith.constant 0.000000e+00 : f32
      %36 = vector.broadcast %cst_20 : f32 to vector<256x128xf32>
      %37 = arith.cmpf oge, %35, %36 : vector<256x128xf32>
      %cst_21 = arith.constant 2.000000e-01 : f32
      %38 = vector.broadcast %cst_21 : f32 to vector<256x128xf32>
      %39 = arith.mulf %38, %35 : vector<256x128xf32>
      %40 = arith.select %37, %35, %39 : vector<256x128xi1>, vector<256x128xf32>
      %41 = vector.shape_cast %40 : vector<256x128xf32> to vector<16x16x128xf32>
      %c0_22 = arith.constant 0 : index
      %c0_23 = arith.constant 0 : index
      %42 = vector.load %arg6[%c0_22, %c0_23] : memref<16x128xf32, #tpu.memory_space<vmem>>, vector<16x128xf32>
      %43 = vector.shape_cast %42 : vector<16x128xf32> to vector<1x16x128xf32>
      %44 = vector.broadcast %43 : vector<1x16x128xf32> to vector<16x16x128xf32>
      %45 = arith.mulf %41, %44 : vector<16x16x128xf32>
      %cst_24 = arith.constant dense<0.000000e+00> : vector<16x16xf32>
      %46 = vector.multi_reduction <add>, %45, %cst_24 [2] : vector<16x16x128xf32> to vector<16x16xf32>
      %cst_25 = arith.constant dense<0.000000e+00> : vector<16xf32>
      %47 = vector.multi_reduction <add>, %46, %cst_25 [1] : vector<16x16xf32> to vector<16xf32>
      %48 = vector.shape_cast %47 : vector<16xf32> to vector<16x1xf32>
      %c0_26 = arith.constant 0 : index
      %c0_27 = arith.constant 0 : index
      %49 = vector.load %arg7[%c0_26, %c0_27] : memref<1x1xf32, #tpu.memory_space<vmem>>, vector<1x1xf32>
      %50 = vector.broadcast %49 : vector<1x1xf32> to vector<16x1xf32>
      %51 = arith.addf %48, %50 : vector<16x1xf32>
      %cst_28 = arith.constant 0.000000e+00 : f32
      %52 = vector.broadcast %cst_28 : f32 to vector<16x1xf32>
      %53 = arith.subf %52, %51 : vector<16x1xf32>
      %54 = math.exp %53 : vector<16x1xf32>
      %cst_29 = arith.constant 1.000000e+00 : f32
      %55 = vector.broadcast %cst_29 : f32 to vector<16x1xf32>
      %56 = arith.addf %55, %54 : vector<16x1xf32>
      %cst_30 = arith.constant 1.000000e+00 : f32
      %57 = vector.broadcast %cst_30 : f32 to vector<16x1xf32>
      %58 = arith.divf %57, %56 : vector<16x1xf32>
      %59 = vector.shape_cast %58 : vector<16x1xf32> to vector<16x1xf32>
      %60 = vector.broadcast %59 : vector<16x1xf32> to vector<16x128xf32>
      %c0_31 = arith.constant 0 : index
      %c0_32 = arith.constant 0 : index
      %61 = vector.load %arg8[%c0_31, %c0_32] : memref<16x128xf32, #tpu.memory_space<vmem>>, vector<16x128xf32>
      tpu.vector_store %arg8[%c0_31, %c0_32], %60 {strides = array<i32>} : memref<16x128xf32, #tpu.memory_space<vmem>>, vector<16x128xf32>,
    } else {
    }
    return
  }
  func.func @transform_0(%arg0: i32, %arg1: i32) -> (i32, i32) {
    %c0_i32 = arith.constant 0 : i32
    %c0_i32_0 = arith.constant 0 : i32
    return %arg1, %c0_i32 : i32, i32
  }
  func.func @transform_1(%arg0: i32, %arg1: i32) -> (i32, i32) {
    %c0_i32 = arith.constant 0 : i32
    %c0_i32_0 = arith.constant 0 : i32
    %c0_i32_1 = arith.constant 0 : i32
    return %c0_i32, %c0_i32_0 : i32, i32
  }
  func.func @transform_2(%arg0: i32, %arg1: i32) -> (i32, i32) {
    %c0_i32 = arith.constant 0 : i32
    %c0_i32_0 = arith.constant 0 : i32
    %c0_i32_1 = arith.constant 0 : i32
    return %c0_i32, %c0_i32_0 : i32, i32
  }
  func.func @transform_3(%arg0: i32, %arg1: i32) -> (i32, i32) {
    %c0_i32 = arith.constant 0 : i32
    %c0_i32_0 = arith.constant 0 : i32
    %c0_i32_1 = arith.constant 0 : i32
    return %c0_i32, %c0_i32_0 : i32, i32
  }
  func.func @transform_4(%arg0: i32, %arg1: i32) -> (i32, i32) {
    %c0_i32 = arith.constant 0 : i32
    %c0_i32_0 = arith.constant 0 : i32
    %c0_i32_1 = arith.constant 0 : i32
    return %c0_i32, %c0_i32_0 : i32, i32
  }
  func.func @transform_5(%arg0: i32, %arg1: i32) -> (i32, i32) {
    %c0_i32 = arith.constant 0 : i32
    %c0_i32_0 = arith.constant 0 : i32
    %c0_i32_1 = arith.constant 0 : i32
    return %c0_i32, %c0_i32_0 : i32, i32
  }
  func.func @transform_6(%arg0: i32, %arg1: i32) -> (i32, i32) {
    %c0_i32 = arith.constant 0 : i32
    %c0_i32_0 = arith.constant 0 : i32
    return %arg1, %c0_i32 : i32, i32
  }
}

</mosaic_0001>

<bundles_post_ra>
// kernel: d_get_logits_cond.1
= control target key start
LH: loop header
LB: loop body
LE: loop exit
PB: predicated region body
PF: predicated region fallthrough
CT: control target
= control target key end

     0   :  { %s4420_s23 = smov 0   ;;  %s4422_s24 = smov 0   ;;  %s5800_s0 = inlined_call_operand.vmem [shape: bf16[256,1152], index: 0, kind: input, shape index: {}]   ;;  %s5801_s1 = inlined_call_operand.vmem [shape: bf16[1152,128], index: 1, kind: input, shape index: {}]   ;;  %s5802_s2 = inlined_call_operand.vmem [shape: f32[1,128], index: 2, kind: input, shape index: {}]   ;;  %s5803_s3 = inlined_call_operand.vmem [shape: f32[1,128], index: 3, kind: input, shape index: {}]   ;;  %s5804_s4 = inlined_call_operand.vmem [shape: f32[16,128], index: 4, kind: input, shape index: {}]   ;;  %s5805_s5 = inlined_call_operand.<no memory space> [shape: f32[1,1], index: 5, kind: input, shape index: {}]   ;;  %s5806_s6 = inlined_call_operand.vmem [shape: f32[16,128], index: 6, kind: output, shape index: {}]  }
   0x1   :  { %v11_v0 = vstv %s5805_s5  ;;  %s4424_s25 = smov 0  }
   0x2   :  { %12 = vst [vmem:[#allocation4] sm:$0x1] %v11_v0 }
   0x3 LB: > { %s30_s5 = sadd.s32 1, %s4373_s24  ;;  %p3274_p0 = scmp.ge.s32.totalorder %s4377_s25, 1  ;;  %s4377_s25 = sphi %s4424_s25, %s18_s25   ;;  %s4373_s24 = sphi %s4422_s24, %s5808_s24   ;;  %s4369_s23 = sphi %s4420_s23, %s5807_s23  }
   0x4   : > { %p32_p1 = scmp.ge.s32.totalorder %s30_s5, 2  ;;  %p228_p2 = scmp.lt.s32.totalorder %s4377_s25, 3 }
   0x6   : > { %s5810_s5 = smov (%p32_p1, %s30_s5), 0  ;;  %p229_p3 = pnand %p3274_p0, %p228_p2 }
   0x7   : > { %p273_p4 = scmp.eq.s32.totalorder (!%p229_p3), %s4369_s23, 0 }
   0x8   : > { %232 = sbr.rel (%p229_p3) target bundleno = 1178 (0x49a), region = 44 }
   0xf   : > { %278 = sbr.rel (!%p273_p4) target bundleno = 22 (0x16), region = 48  ;;  %v4379_v1 = vmov (%p273_p4), 0.0  }
  0x10   : > { %279 = vst [vmem:[#allocation2] sm:$0x1] (%p273_p4), %v4379_v1  ;;  %280 = vst [vmem:[#allocation3] sm:$0x1] (%p273_p4), %v4379_v1 }
  0x16 PF: > { %v4063_v2 = vld [vmem:[%s5801_s1 + $0x40] sm:$0xff]   ;;  %v4065_v4 = vld [vmem:[%s5801_s1 + $0x48] sm:$0xff]   ;;  %v4067_v6 = vld [vmem:[%s5801_s1 + $0x50] sm:$0xff]   ;;  %p3492_p5 = scmp.ne.s32.totalorder %s4369_s23, 0 }
  0x17   : > { %v4064_v3 = vld [vmem:[%s5801_s1] sm:$0xff]   ;;  %3500 = vmatprep.subr.bf16.mxu0 %v4063_v2  ;;  %4020 = vmatprep.subr.bf16.mxu1 %v4063_v2  ;;  %v4066_v5 = vld [vmem:[%s5801_s1 + $0x8] sm:$0xff]   ;;  %v4068_v7 = vld [vmem:[%s5801_s1 + $0x10] sm:$0xff]  }
  0x18   : > { %3501 = vmatpush3.bf16.msra.mxu0 %v4064_v3  ;;  %4028 = vmatpush3.bf16.msra.mxu1 %v4064_v3  ;;  %v4069_v8 = vld [vmem:[%s5801_s1 + $0x58] sm:$0xff]   ;;  %v4071_v10 = vld [vmem:[%s5801_s1 + $0x60] sm:$0xff]   ;;  %v4073_v12 = vld [vmem:[%s5801_s1 + $0x68] sm:$0xff]  }
  0x19   : > { %3502 = vmatprep.subr.bf16.mxu0 %v4065_v4  ;;  %4021 = vmatprep.subr.bf16.mxu1 %v4065_v4  ;;  %v4070_v9 = vld [vmem:[%s5801_s1 + $0x18] sm:$0xff]   ;;  %v4072_v11 = vld [vmem:[%s5801_s1 + $0x20] sm:$0xff]   ;;  %v4074_v15 = vld [vmem:[%s5801_s1 + $0x28] sm:$0xff]  }
  0x1a   : > { %v4081_v13 = vld [vmem:[%s5800_s0 + $0x4] ss:$36 sps:$4 sm:$0xff]   ;;  %v4075_v16 = vld [vmem:[%s5801_s1 + $0x70] sm:$0xff]   ;;  %v4077_v18 = vld [vmem:[%s5801_s1 + $0x78] sm:$0xff]  }
  0x1b   : > { %v4084_v14 = vld [vmem:[%s5800_s0 + $0x364] ss:$36 sps:$4 sm:$0xff]   ;;  %1785 = vmatprep.mubr.bf16.mxu0 %v4081_v13  ;;  %v4076_v17 = vld [vmem:[%s5801_s1 + $0x30] sm:$0xff]   ;;  %v4078_v19 = vld [vmem:[%s5801_s1 + $0x38] sm:$0xff]  }
  0x1c   : > { %3503 = vmatpush3.bf16.msra.mxu0 %v4066_v5  ;;  %4029 = vmatpush3.bf16.msra.mxu1 %v4066_v5  ;;  %v4085_v20 = vld [vmem:[%s5801_s1 + $0xc0] sm:$0xff]   ;;  %v4087_v25 = vld [vmem:[%s5801_s1 + $0xc8] sm:$0xff]   ;;  %v4097_v33 = vld [vmem:[%s5801_s1 + $0xd0] sm:$0xff]  }
  0x1d   : > { %3504 = vmatprep.subr.bf16.mxu0 %v4067_v6  ;;  %4022 = vmatprep.subr.bf16.mxu1 %v4067_v6  ;;  %v4079_v21 = vld [vmem:[%s5800_s0] ss:$36 sps:$4 sm:$0xff]   ;;  %v4091_v27 = vld [vmem:[%s5800_s0 + $0x4c] ss:$36 sps:$4 sm:$0xff]   ;;  %v4099_v36 = vld [vmem:[%s5801_s1 + $0xd8] sm:$0xff]  }
  0x1e   : > { %1881 = vmatprep.mubr.bf16.mxu1 %v4084_v14  ;;  %v4082_v22 = vld [vmem:[%s5800_s0 + $0x360] ss:$36 sps:$4 sm:$0xff]   ;;  %v4093_v28 = vld [vmem:[%s5800_s0 + $0x3ac] ss:$36 sps:$4 sm:$0xff]   ;;  %v4101_v37 = vld [vmem:[%s5800_s0 + $0x94] ss:$36 sps:$4 sm:$0xff]  }
  0x1f   : > { %v4088_v23 = vld [vmem:[%s5801_s1 + $0x140] sm:$0xff]   ;;  %v4089_v29 = vld [vmem:[%s5801_s1 + $0x88] sm:$0xff]   ;;  %v4098_v34 = vld [vmem:[%s5801_s1 + $0x90] sm:$0xff]  }
  0x20   : > { %3505 = vmatpush3.bf16.msra.mxu0 %v4068_v7  ;;  %4030 = vmatpush3.bf16.msra.mxu1 %v4068_v7  ;;  %v4086_v24 = vld [vmem:[%s5801_s1 + $0x80] sm:$0xff]   ;;  %v4108_v30 = vld [vmem:[%s5801_s1 + $0x148] sm:$0xff]   ;;  %v4103_v38 = vld [vmem:[%s5800_s0 + $0x3f4] ss:$36 sps:$4 sm:$0xff]  }
  0x21   : > { %3506 = vmatprep.subr.bf16.mxu0 %v4069_v8  ;;  %4023 = vmatprep.subr.bf16.mxu1 %v4069_v8  ;;  %v4090_v26 = vld [vmem:[%s5801_s1 + $0x100] sm:$0xff]   ;;  %v4095_v31 = vld [vmem:[%s5800_s0 + $0x48] ss:$36 sps:$4 sm:$0xff]   ;;  %v4100_v39 = vld [vmem:[%s5801_s1 + $0x98] sm:$0xff]  }
  0x22   : > { %v4096_v32 = vld [vmem:[%s5800_s0 + $0x3a8] ss:$36 sps:$4 sm:$0xff]   ;;  %v4105_v40 = vld [vmem:[%s5800_s0 + $0x90] ss:$36 sps:$4 sm:$0xff]   ;;  %v4107_v42 = vld [vmem:[%s5801_s1 + $0xe0] sm:$0xff]  }
  0x23   : > { %v4110_v35 = vld [vmem:[%s5801_s1 + $0x108] sm:$0xff]   ;;  %v4106_v41 = vld [vmem:[%s5800_s0 + $0x3f0] ss:$36 sps:$4 sm:$0xff]   ;;  %v4109_v43 = vld [vmem:[%s5801_s1 + $0xa0] sm:$0xff]  }
  0x24   : > { %3507 = vmatpush3.bf16.msra.mxu0 %v4070_v9  ;;  %4031 = vmatpush3.bf16.msra.mxu1 %v4070_v9  ;;  %v4111_v44 = vld [vmem:[%s5801_s1 + $0xe8] sm:$0xff]   ;;  %v4122_v45 = vld [vmem:[%s5801_s1 + $0x150] sm:$0xff]   ;;  %v4113_v46 = vld [vmem:[%s5800_s0 + $0xdc] ss:$36 sps:$4 sm:$0xff]  }
  0x25   : > { %3508 = vmatprep.subr.bf16.mxu0 %v4071_v10  ;;  %4024 = vmatprep.subr.bf16.mxu1 %v4071_v10  ;;  %v4115_v47 = vld [vmem:[%s5800_s0 + $0x43c] ss:$36 sps:$4 sm:$0xff]   ;;  %v4124_v48 = vld [vmem:[%s5801_s1 + $0x110] sm:$0xff]   ;;  %v4112_v49 = vld [vmem:[%s5801_s1 + $0xa8] sm:$0xff]  }
  0x26   : > { %v4119_v50 = vld [vmem:[%s5801_s1 + $0xf0] sm:$0xff]   ;;  %v4117_v51 = vld [vmem:[%s5800_s0 + $0xd8] ss:$36 sps:$4 sm:$0xff]   ;;  %v4125_v55 = vld [vmem:[%s5800_s0 + $0x124] ss:$36 sps:$4 sm:$0xff]  }
  0x27   : > { %v4118_v52 = vld [vmem:[%s5800_s0 + $0x438] ss:$36 sps:$4 sm:$0xff]   ;;  %v4120_v53 = vld [vmem:[%s5801_s1 + $0xb0] sm:$0xff]   ;;  %v4127_v60 = vld [vmem:[%s5800_s0 + $0x8] ss:$36 sps:$4 sm:$0xff]  }
  0x28   : > { %3509 = vmatpush3.bf16.msra.mxu0 %v4072_v11  ;;  %4032 = vmatpush3.bf16.msra.mxu1 %v4072_v11  ;;  %v4121_v54 = vld [vmem:[%s5801_s1 + $0xf8] sm:$0xff]   ;;  %v4129_v56 = vld [vmem:[%s5800_s0 + $0xc] ss:$36 sps:$4 sm:$0xff]   ;;  %v4130_v61 = vld [vmem:[%s5800_s0 + $0x120] ss:$36 sps:$4 sm:$0xff]  }
  0x29   : > { %3510 = vmatprep.subr.bf16.mxu0 %v4073_v12  ;;  %4025 = vmatprep.subr.bf16.mxu1 %v4073_v12  ;;  %v4139_v57 = vld [vmem:[%s5801_s1 + $0x158] sm:$0xff]   ;;  %v4131_v62 = vld [vmem:[%s5801_s1 + $0x1c0] sm:$0xff]   ;;  %v4133_v0 = vld [vmem:[%s5800_s0 + $0x16c] ss:$36 sps:$4 sm:$0xff]  }
  0x2a   : > { %v4140_v58 = vld [vmem:[%s5801_s1 + $0x118] sm:$0xff]   ;;  %v4132_v63 = vld [vmem:[%s5801_s1 + $0x180] sm:$0xff]   ;;  %v4147_v3 = vld [vmem:[%s5801_s1 + $0x1c8] sm:$0xff]  }
  0x2b   : > { %v4123_v59 = vld [vmem:[%s5801_s1 + $0xb8] sm:$0xff]   ;;  %v4149_v2 = vld [vmem:[%s5801_s1 + $0x160] sm:$0xff]   ;;  %v4148_v5 = vld [vmem:[%s5801_s1 + $0x188] sm:$0xff]  }
  0x2c   : > { %3511 = vmatpush3.bf16.msra.mxu0 %v4074_v15  ;;  %4033 = vmatpush3.bf16.msra.mxu1 %v4074_v15  ;;  %v4135_v1 = vld [vmem:[%s5800_s0 + $0x54] ss:$36 sps:$4 sm:$0xff]   ;;  %v4150_v4 = vld [vmem:[%s5801_s1 + $0x120] sm:$0xff]   ;;  %v4137_v6 = vld [vmem:[%s5800_s0 + $0x168] ss:$36 sps:$4 sm:$0xff]  }
  0x2d   : > { %3512 = vmatprep.subr.bf16.mxu0 %v4075_v16  ;;  %4026 = vmatprep.subr.bf16.mxu1 %v4075_v16  ;;  %v4138_v7 = vld [vmem:[%s5800_s0 + $0x50] ss:$36 sps:$4 sm:$0xff]   ;;  %v4143_v9 = vld [vmem:[%s5800_s0 + $0x9c] ss:$36 sps:$4 sm:$0xff]   ;;  %v4163_v10 = vld [vmem:[%s5801_s1 + $0x168] sm:$0xff]  }
  0x2e   : > { %v4141_v8 = vld [vmem:[%s5800_s0 + $0x1b4] ss:$36 sps:$4 sm:$0xff]   ;;  %v4165_v12 = vld [vmem:[%s5801_s1 + $0x128] sm:$0xff]   ;;  %v4151_v16 = vld [vmem:[%s5800_s0 + $0x1fc] ss:$36 sps:$4 sm:$0xff]  }
  0x2f   : > { %v4164_v11 = vld [vmem:[%s5801_s1 + $0x1d0] sm:$0xff]   ;;  %v4146_v15 = vld [vmem:[%s5800_s0 + $0x98] ss:$36 sps:$4 sm:$0xff]  }
  0x30   : > { %3513 = vmatpush3.bf16.msra.mxu0 %v4076_v17  ;;  %4034 = vmatpush3.bf16.msra.mxu1 %v4076_v17  ;;  %v4166_v13 = vld [vmem:[%s5801_s1 + $0x190] sm:$0xff]  }
  0x31   : > { %3514 = vmatprep.subr.bf16.mxu0 %v4077_v18  ;;  %4027 = vmatprep.subr.bf16.mxu1 %v4077_v18  ;;  %v4145_v14 = vld [vmem:[%s5800_s0 + $0x1b0] ss:$36 sps:$4 sm:$0xff]  }
  0x32   : > { %v4173_v17 = vld [vmem:[%s5801_s1 + $0x170] sm:$0xff]  }
  0x33   : > { %v4174_v18 = vld [vmem:[%s5801_s1 + $0x130] sm:$0xff]  }
  0x34   : > { %3515 = vmatpush3.bf16.msra.mxu0 %v4078_v19  ;;  %4035 = vmatpush3.bf16.msra.mxu1 %v4078_v19  ;;  %v4153_v19 = vld [vmem:[%s5800_s0 + $0xe4] ss:$36 sps:$4 sm:$0xff]  }
  0x35   : > { %3612 = vmatprep.subr.bf16.mxu1 %v4085_v20  ;;  %3724 = vmatprep.subr.bf16.mxu0 %v4088_v23  ;;  %v4181_v20 = vld [vmem:[%s5801_s1 + $0x1d8] sm:$0xff]   ;;  %v4156_v23 = vld [vmem:[%s5800_s0 + $0xe0] ss:$36 sps:$4 sm:$0xff]  }
  0x37   : > { %1786 = vmatmul.mubr.bf16.vlgmr.msra.gmra.mrb[0].mxu0 %v4079_v21  ;;  %1882 = vmatmul.mubr.bf16.vlgmr.msra.gmra.mrb[0].mxu1 %v4082_v22  ;;  %v4182_v21 = vld [vmem:[%s5801_s1 + $0x198] sm:$0xff]  }
  0x38   : > { %3613 = vmatpush3.bf16.msra.mxu1 %v4086_v24  ;;  %3725 = vmatpush3.bf16.msra.mxu0 %v4090_v26  ;;  %v4155_v22 = vld [vmem:[%s5800_s0 + $0x1f8] ss:$36 sps:$4 sm:$0xff]   ;;  %v4157_v24 = vld [vmem:[%s5800_s0 + $0x244] ss:$36 sps:$4 sm:$0xff]  }
  0x39   : > { %3614 = vmatprep.subr.bf16.mxu1 %v4087_v25  ;;  %1793 = vmatprep.mubr.bf16.mxu0 %v4091_v27  ;;  %v4159_v25 = vld [vmem:[%s5800_s0 + $0x12c] ss:$36 sps:$4 sm:$0xff]   ;;  %v4189_v26 = vld [vmem:[%s5801_s1 + $0x178] sm:$0xff]  }
  0x3a   : > { %1889 = vmatprep.mubr.bf16.mxu1 %v4093_v28  ;;  %3726 = vmatprep.subr.bf16.mxu0 %v4108_v30  ;;  %v4190_v27 = vld [vmem:[%s5801_s1 + $0x138] sm:$0xff]   ;;  %v4197_v28 = vld [vmem:[%s5801_s1 + $0x1e0] sm:$0xff]  }
  0x3b   : > { %v4198_v30 = vld [vmem:[%s5801_s1 + $0x1a0] sm:$0xff]  }
  0x3c   : > { %3615 = vmatpush3.bf16.msra.mxu1 %v4089_v29  ;;  %3727 = vmatpush3.bf16.msra.mxu0 %v4110_v35  ;;  %v4161_v29 = vld [vmem:[%s5800_s0 + $0x240] ss:$36 sps:$4 sm:$0xff]   ;;  %v4212_v35 = vld [vmem:[%s5801_s1 + $0x1e8] sm:$0xff]  }
  0x3d   : > { %3616 = vmatprep.subr.bf16.mxu1 %v4097_v33  ;;  %3728 = vmatprep.subr.bf16.mxu0 %v4122_v45  ;;  %v4167_v33 = vld [vmem:[%s5800_s0 + $0x28c] ss:$36 sps:$4 sm:$0xff]   ;;  %v4183_v45 = vld [vmem:[%s5800_s0 + $0x31c] ss:$36 sps:$4 sm:$0xff]  }
  0x3f   : > { %1794 = vmatmul.mubr.bf16.gmra.mrb[4].mxu0 %v4095_v31  ;;  %1890 = vmatmul.mubr.bf16.gmra.mrb[4].mxu1 %v4096_v32  ;;  %v4199_v31 = vld [vmem:[%s5801_s1 + $0x200] sm:$0xff]   ;;  %v4162_v32 = vld [vmem:[%s5800_s0 + $0x128] ss:$36 sps:$4 sm:$0xff]  }
  0x40   : > { %3617 = vmatpush3.bf16.msra.mxu1 %v4098_v34  ;;  %1801 = vmatprep.mubr.bf16.mxu0 %v4101_v37  ;;  %v4169_v34 = vld [vmem:[%s5800_s0 + $0x174] ss:$36 sps:$4 sm:$0xff]   ;;  %v4213_v37 = vld [vmem:[%s5801_s1 + $0x1a8] sm:$0xff]  }
  0x41   : > { %3618 = vmatprep.subr.bf16.mxu1 %v4099_v36  ;;  %1897 = vmatprep.mubr.bf16.mxu1 %v4103_v38  ;;  %v4171_v36 = vld [vmem:[%s5800_s0 + $0x288] ss:$36 sps:$4 sm:$0xff]   ;;  %v4172_v38 = vld [vmem:[%s5800_s0 + $0x170] ss:$36 sps:$4 sm:$0xff]  }
  0x42   : > { %3729 = vmatpush3.bf16.msra.mxu0 %v4124_v48  ;;  %v4188_v48 = vld [vmem:[%s5800_s0 + $0x200] ss:$36 sps:$4 sm:$0xff]  }
  0x43   : > { %3730 = vmatprep.subr.bf16.mxu0 %v4139_v57  ;;  %v4214_v57 = vld [vmem:[%s5801_s1 + $0x208] sm:$0xff]  }
  0x44   : > { %3619 = vmatpush3.bf16.msra.mxu1 %v4100_v39  ;;  %v4175_v39 = vld [vmem:[%s5800_s0 + $0x2d4] ss:$36 sps:$4 sm:$0xff]  }
  0x45   : > { %3620 = vmatprep.subr.bf16.mxu1 %v4107_v42  ;;  %v4180_v42 = vld [vmem:[%s5800_s0 + $0x1b8] ss:$36 sps:$4 sm:$0xff]  }
  0x46   : > { %3731 = vmatpush3.bf16.msra.mxu0 %v4140_v58  ;;  %v4229_v58 = vld [vmem:[%s5801_s1 + $0x210] sm:$0xff]  }
  0x47   : > { %1802 = vmatmul.mubr.bf16.gmra.mrb[8].mxu0 %v4105_v40  ;;  %1898 = vmatmul.mubr.bf16.gmra.mrb[8].mxu1 %v4106_v41  ;;  %v4177_v40 = vld [vmem:[%s5800_s0 + $0x1bc] ss:$36 sps:$4 sm:$0xff]   ;;  %v4179_v41 = vld [vmem:[%s5800_s0 + $0x2d0] ss:$36 sps:$4 sm:$0xff]  }
  0x48   : > { %3621 = vmatpush3.bf16.msra.mxu1 %v4109_v43  ;;  %1809 = vmatprep.mubr.bf16.mxu0 %v4113_v46  ;;  %v4227_v43 = vld [vmem:[%s5801_s1 + $0x1f0] sm:$0xff]   ;;  %v4185_v46 = vld [vmem:[%s5800_s0 + $0x204] ss:$36 sps:$4 sm:$0xff]  }
  0x49   : > { %3622 = vmatprep.subr.bf16.mxu1 %v4111_v44  ;;  %1905 = vmatprep.mubr.bf16.mxu1 %v4115_v47  ;;  %v4228_v44 = vld [vmem:[%s5801_s1 + $0x1b0] sm:$0xff]   ;;  %v4187_v47 = vld [vmem:[%s5800_s0 + $0x318] ss:$36 sps:$4 sm:$0xff]  }
  0x4a   : > { %3732 = vmatprep.subr.bf16.mxu0 %v4149_v2  ;;  %v4211_v2 = vld [vmem:[%s5800_s0 + $0xa0] ss:$36 sps:$4 sm:$0xff]  }
  0x4b   : > { %3733 = vmatpush3.bf16.msra.mxu0 %v4150_v4  ;;  %v4217_v4 = vld [vmem:[%s5800_s0 + $0xec] ss:$36 sps:$4 sm:$0xff]  }
  0x4c   : > { %3623 = vmatpush3.bf16.msra.mxu1 %v4112_v49  ;;  %3734 = vmatprep.subr.bf16.mxu0 %v4163_v10  ;;  %v4242_v49 = vld [vmem:[%s5801_s1 + $0x1f8] sm:$0xff]  }
  0x4d   : > { %3624 = vmatprep.subr.bf16.mxu1 %v4119_v50  ;;  %v4243_v50 = vld [vmem:[%s5801_s1 + $0x1b8] sm:$0xff]  }
  0x4e   : > { %v4223_v10 = vld [vmem:[%s5800_s0 + $0x134] ss:$36 sps:$4 sm:$0xff]  }
  0x4f   : > { %1810 = vmatmul.mubr.bf16.gmra.mrb[12].mxu0 %v4117_v51  ;;  %1906 = vmatmul.mubr.bf16.gmra.mrb[12].mxu1 %v4118_v52  ;;  %v4191_v51 = vld [vmem:[%s5800_s0 + $0x24c] ss:$36 sps:$4 sm:$0xff]   ;;  %v4195_v52 = vld [vmem:[%s5800_s0 + $0x14] ss:$36 sps:$4 sm:$0xff]  }
  0x50   : > { %3625 = vmatpush3.bf16.msra.mxu1 %v4120_v53  ;;  %1817 = vmatprep.mubr.bf16.mxu0 %v4125_v55  ;;  %v4193_v53 = vld [vmem:[%s5800_s0 + $0x10] ss:$36 sps:$4 sm:$0xff]  }
  0x51   : > { %3626 = vmatprep.subr.bf16.mxu1 %v4121_v54  ;;  %1946 = vmatprep.mubr.bf16.mxu1 %v4129_v56  ;;  %v4196_v54 = vld [vmem:[%s5800_s0 + $0x248] ss:$36 sps:$4 sm:$0xff]   ;;  %v4200_v55 = vld [vmem:[%s5800_s0 + $0x294] ss:$36 sps:$4 sm:$0xff]   ;;  %v4202_v56 = vld [vmem:[%s5800_s0 + $0x5c] ss:$36 sps:$4 sm:$0xff]  }
  0x52   : > { %3735 = vmatpush3.bf16.msra.mxu0 %v4165_v12  ;;  %v4225_v12 = vld [vmem:[%s5800_s0 + $0x368] ss:$36 sps:$4 sm:$0xff]  }
  0x53   : > { %3736 = vmatprep.subr.bf16.mxu0 %v4173_v17  ;;  %v4235_v17 = vld [vmem:[%s5800_s0 + $0x178] ss:$36 sps:$4 sm:$0xff]  }
  0x54   : > { %3627 = vmatpush3.bf16.msra.mxu1 %v4123_v59  ;;  %v4204_v59 = vld [vmem:[%s5800_s0 + $0x290] ss:$36 sps:$4 sm:$0xff]  }
  0x55   : > { %3836 = vmatprep.subr.bf16.mxu1 %v4131_v62  ;;  %v4208_v62 = vld [vmem:[%s5800_s0 + $0xa4] ss:$36 sps:$4 sm:$0xff]  }
  0x56   : > { %3737 = vmatpush3.bf16.msra.mxu0 %v4174_v18  ;;  %v4236_v18 = vld [vmem:[%s5800_s0 + $0x3fc] ss:$36 sps:$4 sm:$0xff]  }
  0x57   : > { %1818 = vmatmul.mubr.bf16.gmra.mrb[16].mxu0 %v4130_v61  ;;  %1947 = vmatmul.mubr.bf16.vlgmr.msra.gmra.mrb[16].mxu1 %v4127_v60  ;;  %v4205_v60 = vld [vmem:[%s5800_s0 + $0x58] ss:$36 sps:$4 sm:$0xff]  }
  0x58   : > { %3837 = vmatpush3.bf16.msra.mxu1 %v4132_v63  ;;  %1825 = vmatprep.mubr.bf16.mxu0 %v4133_v0  ;;  %v4206_v61 = vld [vmem:[%s5800_s0 + $0x2dc] ss:$36 sps:$4 sm:$0xff]  }
  0x59   : > { %1954 = vmatprep.mubr.bf16.mxu1 %v4135_v1  ;;  %3838 = vmatprep.subr.bf16.mxu1 %v4147_v3  ;;  %v4244_v63 = vld [vmem:[%s5801_s1 + $0x218] sm:$0xff]   ;;  %v4257_v0 = vld [vmem:[%s5801_s1 + $0x220] sm:$0xff]  }
  0x5a   : > { %3738 = vmatprep.subr.bf16.mxu0 %v4189_v26  ;;  %v4210_v1 = vld [vmem:[%s5800_s0 + $0x2d8] ss:$36 sps:$4 sm:$0xff]   ;;  %v4215_v3 = vld [vmem:[%s5800_s0 + $0x324] ss:$36 sps:$4 sm:$0xff]  }
  0x5b   : > { %3739 = vmatpush3.bf16.msra.mxu0 %v4190_v27  ;;  %v4251_v26 = vld [vmem:[%s5800_s0 + $0x254] ss:$36 sps:$4 sm:$0xff]   ;;  %v4255_v27 = vld [vmem:[%s5800_s0 + $0x1c] ss:$36 sps:$4 sm:$0xff]  }
  0x5c   : > { %3839 = vmatpush3.bf16.msra.mxu1 %v4148_v5  ;;  %3972 = vmatprep.subr.bf16.mxu0 %v4199_v31  ;;  %v4270_v5 = vld [vmem:[%s5801_s1 + $0x228] sm:$0xff]  }
  0x5d   : > { %3840 = vmatprep.subr.bf16.mxu1 %v4164_v11  ;;  %v4296_v11 = vld [vmem:[%s5801_s1 + $0x238] sm:$0xff]  }
  0x5f   : > { %1826 = vmatmul.mubr.bf16.gmra.mrb[20].mxu0 %v4137_v6  ;;  %1955 = vmatmul.mubr.bf16.gmra.mrb[20].mxu1 %v4138_v7  ;;  %v4219_v6 = vld [vmem:[%s5800_s0 + $0x320] ss:$36 sps:$4 sm:$0xff]   ;;  %v4220_v7 = vld [vmem:[%s5800_s0 + $0xe8] ss:$36 sps:$4 sm:$0xff]  }
  0x60   : > { %1833 = vmatprep.mubr.bf16.mxu0 %v4141_v8  ;;  %1962 = vmatprep.mubr.bf16.mxu1 %v4143_v9  ;;  %v4283_v8 = vld [vmem:[%s5801_s1 + $0x230] sm:$0xff]  }
  0x61   : > { %3841 = vmatpush3.bf16.msra.mxu1 %v4166_v13  ;;  %v4221_v9 = vld [vmem:[%s5800_s0 + $0x36c] ss:$36 sps:$4 sm:$0xff]  }
  0x62   : > { %3842 = vmatprep.subr.bf16.mxu1 %v4181_v20  ;;  %v4226_v13 = vld [vmem:[%s5800_s0 + $0x130] ss:$36 sps:$4 sm:$0xff]   ;;  %v4240_v20 = vld [vmem:[%s5800_s0 + $0x3f8] ss:$36 sps:$4 sm:$0xff]  }
  0x65   : > { %3843 = vmatpush3.bf16.msra.mxu1 %v4182_v21  ;;  %v4241_v21 = vld [vmem:[%s5800_s0 + $0x1c0] ss:$36 sps:$4 sm:$0xff]  }
  0x66   : > { %3844 = vmatprep.subr.bf16.mxu1 %v4197_v28  ;;  %v4253_v28 = vld [vmem:[%s5800_s0 + $0x18] ss:$36 sps:$4 sm:$0xff]  }
  0x67   : > { %1834 = vmatmul.mubr.bf16.gmra.mrb[24].mxu0 %v4145_v14  ;;  %1963 = vmatmul.mubr.bf16.gmra.mrb[24].mxu1 %v4146_v15  ;;  %v4230_v14 = vld [vmem:[%s5800_s0 + $0x3b4] ss:$36 sps:$4 sm:$0xff]   ;;  %v4232_v15 = vld [vmem:[%s5800_s0 + $0x17c] ss:$36 sps:$4 sm:$0xff]  }
  0x68   : > { %1841 = vmatprep.mubr.bf16.mxu0 %v4151_v16  ;;  %1970 = vmatprep.mubr.bf16.mxu1 %v4153_v19  ;;  %v4234_v16 = vld [vmem:[%s5800_s0 + $0x3b0] ss:$36 sps:$4 sm:$0xff]   ;;  %v4238_v19 = vld [vmem:[%s5800_s0 + $0x1c4] ss:$36 sps:$4 sm:$0xff]  }
  0x69   : > { %3845 = vmatpush3.bf16.msra.mxu1 %v4198_v30  ;;  %v4258_v30 = vld [vmem:[%s5800_s0 + $0x29c] ss:$36 sps:$4 sm:$0xff]  }
  0x6a   : > { %3846 = vmatprep.subr.bf16.mxu1 %v4212_v35  ;;  %v4266_v35 = vld [vmem:[%s5800_s0 + $0xac] ss:$36 sps:$4 sm:$0xff]  }
  0x6d   : > { %3847 = vmatpush3.bf16.msra.mxu1 %v4213_v37  ;;  %v4269_v37 = vld [vmem:[%s5800_s0 + $0xa8] ss:$36 sps:$4 sm:$0xff]  }
  0x6e   : > { %3848 = vmatprep.subr.bf16.mxu1 %v4227_v43  ;;  %v4279_v43 = vld [vmem:[%s5800_s0 + $0x13c] ss:$36 sps:$4 sm:$0xff]  }
  0x6f   : > { %1842 = vmatmul.mubr.bf16.gmra.mrb[28].mxu0 %v4155_v22  ;;  %1971 = vmatmul.mubr.bf16.gmra.mrb[28].mxu1 %v4156_v23  ;;  %v4245_v22 = vld [vmem:[%s5800_s0 + $0x444] ss:$36 sps:$4 sm:$0xff]   ;;  %v4247_v23 = vld [vmem:[%s5800_s0 + $0x20c] ss:$36 sps:$4 sm:$0xff]  }
  0x70   : > { %1849 = vmatprep.mubr.bf16.mxu0 %v4157_v24  ;;  %1978 = vmatprep.mubr.bf16.mxu1 %v4159_v25  ;;  %v4249_v24 = vld [vmem:[%s5800_s0 + $0x440] ss:$36 sps:$4 sm:$0xff]   ;;  %v4250_v25 = vld [vmem:[%s5800_s0 + $0x208] ss:$36 sps:$4 sm:$0xff]  }
  0x71   : > { %3849 = vmatpush3.bf16.msra.mxu1 %v4228_v44  ;;  %v4281_v44 = vld [vmem:[%s5800_s0 + $0x370] ss:$36 sps:$4 sm:$0xff]  }
  0x72   : > { %3850 = vmatprep.subr.bf16.mxu1 %v4242_v49  ;;  %v4289_v49 = vld [vmem:[%s5800_s0 + $0x180] ss:$36 sps:$4 sm:$0xff]  }
  0x75   : > { %3851 = vmatpush3.bf16.msra.mxu1 %v4243_v50  ;;  %v4290_v50 = vld [vmem:[%s5800_s0 + $0x404] ss:$36 sps:$4 sm:$0xff]  }
  0x77   : > { %1850 = vmatmul.mubr.bf16.gmra.mrb[32].mxu0 %v4161_v29  ;;  %1979 = vmatmul.mubr.bf16.gmra.mrb[32].mxu1 %v4162_v32  ;;  %v4256_v29 = vld [vmem:[%s5800_s0 + $0x250] ss:$36 sps:$4 sm:$0xff]   ;;  %v4262_v32 = vld [vmem:[%s5800_s0 + $0x298] ss:$36 sps:$4 sm:$0xff]  }
  0x78   : > { %1857 = vmatprep.mubr.bf16.mxu0 %v4167_v33  ;;  %1986 = vmatprep.mubr.bf16.mxu1 %v4169_v34  ;;  %v4263_v33 = vld [vmem:[%s5800_s0 + $0x60] ss:$36 sps:$4 sm:$0xff]  }
  0x79   : > { %v4264_v34 = vld [vmem:[%s5800_s0 + $0x2e4] ss:$36 sps:$4 sm:$0xff]  }
  0x7f   : > { %1858 = vmatmul.mubr.bf16.gmra.mrb[36].mxu0 %v4171_v36  ;;  %1987 = vmatmul.mubr.bf16.gmra.mrb[36].mxu1 %v4172_v38  ;;  %v4268_v36 = vld [vmem:[%s5800_s0 + $0x2e0] ss:$36 sps:$4 sm:$0xff]   ;;  %v4271_v38 = vld [vmem:[%s5800_s0 + $0x32c] ss:$36 sps:$4 sm:$0xff]  }
  0x80   : > { %1865 = vmatprep.mubr.bf16.mxu0 %v4175_v39  ;;  %1994 = vmatprep.mubr.bf16.mxu1 %v4177_v40  ;;  %v4273_v39 = vld [vmem:[%s5800_s0 + $0xf4] ss:$36 sps:$4 sm:$0xff]   ;;  %v4275_v40 = vld [vmem:[%s5800_s0 + $0x328] ss:$36 sps:$4 sm:$0xff]  }
  0x87   : > { %1866 = vmatmul.mubr.bf16.gmra.mrb[40].mxu0 %v4179_v41  ;;  %1995 = vmatmul.mubr.bf16.gmra.mrb[40].mxu1 %v4180_v42  ;;  %v4276_v41 = vld [vmem:[%s5800_s0 + $0xf0] ss:$36 sps:$4 sm:$0xff]  }
  0x88   : > { %1873 = vmatprep.mubr.bf16.mxu0 %v4183_v45  ;;  %2002 = vmatprep.mubr.bf16.mxu1 %v4185_v46  ;;  %v4277_v42 = vld [vmem:[%s5800_s0 + $0x374] ss:$36 sps:$4 sm:$0xff]   ;;  %v4284_v46 = vld [vmem:[%s5800_s0 + $0x3bc] ss:$36 sps:$4 sm:$0xff]  }
  0x89   : > { %v4282_v45 = vld [vmem:[%s5800_s0 + $0x138] ss:$36 sps:$4 sm:$0xff]  }
  0x8f   : > { %1874 = vmatmul.mubr.bf16.gmra.mrb[44].mxu0 %v4187_v47  ;;  %2003 = vmatmul.mubr.bf16.gmra.mrb[44].mxu1 %v4188_v48  ;;  %v4286_v47 = vld [vmem:[%s5800_s0 + $0x184] ss:$36 sps:$4 sm:$0xff]   ;;  %v4288_v48 = vld [vmem:[%s5800_s0 + $0x3b8] ss:$36 sps:$4 sm:$0xff]  }
  0x90   : > { %2010 = vmatprep.mubr.bf16.mxu1 %v4191_v51  ;;  %2107 = vmatprep.mubr.bf16.mxu0 %v4195_v52  ;;  %v4292_v51 = vld [vmem:[%s5800_s0 + $0x1cc] ss:$36 sps:$4 sm:$0xff]   ;;  %v4294_v52 = vld [vmem:[%s5800_s0 + $0x400] ss:$36 sps:$4 sm:$0xff]  }
  0x97   : > { %2011 = vmatmul.mubr.bf16.gmra.mrb[48].mxu1 %v4196_v54  ;;  %2108 = vmatmul.mubr.bf16.vlgmr.msra.gmra.mrb[48].mxu0 %v4193_v53  ;;  %v4295_v53 = vld [vmem:[%s5800_s0 + $0x1c8] ss:$36 sps:$4 sm:$0xff]  }
  0x98   : > { %3973 = vmatpush3.bf16.msra.mxu0 %v4199_v31  ;;  %2018 = vmatprep.mubr.bf16.mxu1 %v4200_v55  ;;  %v4260_v31 = vld [vmem:[%s5800_s0 + $0x64] ss:$36 sps:$4 sm:$0xff]   ;;  %v4297_v54 = vld [vmem:[%s5800_s0 + $0x44c] ss:$36 sps:$4 sm:$0xff]   ;;  %v4299_v55 = vld [vmem:[%s5800_s0 + $0x214] ss:$36 sps:$4 sm:$0xff]  }
  0x99   : > { %2115 = vmatprep.mubr.bf16.mxu0 %v4202_v56  ;;  %3974 = vmatprep.subr.bf16.mxu0 %v4214_v57 }
  0x9c   : > { %3975 = vmatpush3.bf16.msra.mxu0 %v4214_v57 }
  0x9d   : > { %3976 = vmatprep.subr.bf16.mxu0 %v4229_v58 }
  0x9f   : > { %2019 = vmatmul.mubr.bf16.gmra.mrb[52].mxu1 %v4204_v59  ;;  %2116 = vmatmul.mubr.bf16.gmra.mrb[52].mxu0 %v4205_v60  ;;  %v4301_v60 = vld [vmem:[%s5800_s0 + $0x448] ss:$36 sps:$4 sm:$0xff]  }
  0xa0   : > { %2026 = vmatprep.mubr.bf16.mxu1 %v4206_v61  ;;  %2123 = vmatprep.mubr.bf16.mxu0 %v4208_v62  ;;  %v4302_v61 = vld [vmem:[%s5800_s0 + $0x210] ss:$36 sps:$4 sm:$0xff]  }
  0xa1   : > { %3977 = vmatpush3.bf16.msra.mxu0 %v4229_v58 }
  0xa2   : > { %3978 = vmatprep.subr.bf16.mxu0 %v4244_v63 }
  0xa5   : > { %3979 = vmatpush3.bf16.msra.mxu0 %v4244_v63 }
  0xa6   : > { %3980 = vmatprep.subr.bf16.mxu0 %v4257_v0 }
  0xa7   : > { %2027 = vmatmul.mubr.bf16.gmra.mrb[56].mxu1 %v4210_v1  ;;  %2124 = vmatmul.mubr.bf16.gmra.mrb[56].mxu0 %v4211_v2  ;;  %v4303_v2 = vld [vmem:[%s5800_s0 + $0x25c] ss:$36 sps:$4 sm:$0xff]  }
  0xa8   : > { %2034 = vmatprep.mubr.bf16.mxu1 %v4215_v3  ;;  %2131 = vmatprep.mubr.bf16.mxu0 %v4217_v4  ;;  %v4305_v3 = vld [vmem:[%s5800_s0 + $0x20] ss:$36 sps:$4 sm:$0xff]  }
  0xa9   : > { %3981 = vmatpush3.bf16.msra.mxu0 %v4257_v0 }
  0xaa   : > { %3982 = vmatprep.subr.bf16.mxu0 %v4270_v5 }
  0xad   : > { %3983 = vmatpush3.bf16.msra.mxu0 %v4270_v5 }
  0xae   : > { %3984 = vmatprep.subr.bf16.mxu0 %v4283_v8 }
  0xaf   : > { %2035 = vmatmul.mubr.bf16.gmra.mrb[60].mxu1 %v4219_v6  ;;  %2132 = vmatmul.mubr.bf16.gmra.mrb[60].mxu0 %v4220_v7 }
  0xb0   : > { %2042 = vmatprep.mubr.bf16.mxu1 %v4221_v9  ;;  %2139 = vmatprep.mubr.bf16.mxu0 %v4223_v10 }
  0xb1   : > { %3985 = vmatpush3.bf16.msra.mxu0 %v4283_v8 }
  0xb2   : > { %3986 = vmatprep.subr.bf16.mxu0 %v4296_v11 }
  0xb5   : > { %3987 = vmatpush3.bf16.msra.mxu0 %v4296_v11 }
  0xb7   : > { %2043 = vmatmul.mubr.bf16.gmra.mrb[64].mxu1 %v4225_v12  ;;  %2140 = vmatmul.mubr.bf16.gmra.mrb[64].mxu0 %v4226_v13  ;;  %v4306_v12 = vld [vmem:[%s5800_s0 + $0x258] ss:$36 sps:$4 sm:$0xff]   ;;  %v4307_v13 = vld [vmem:[%s5800_s0 + $0x68] ss:$36 sps:$4 sm:$0xff]  }
  0xb8   : > { %2050 = vmatprep.mubr.bf16.mxu1 %v4230_v14  ;;  %2147 = vmatprep.mubr.bf16.mxu0 %v4232_v15 }
  0xbf   : > { %2051 = vmatmul.mubr.bf16.gmra.mrb[68].mxu1 %v4234_v16  ;;  %2148 = vmatmul.mubr.bf16.gmra.mrb[68].mxu0 %v4235_v17 }
  0xc0   : > { %2058 = vmatprep.mubr.bf16.mxu1 %v4236_v18  ;;  %2155 = vmatprep.mubr.bf16.mxu0 %v4238_v19  ;;  %v4308_v18 = vld [vmem:[%s5800_s0 + $0x2a4] ss:$36 sps:$4 sm:$0xff]   ;;  %v4310_v19 = vld [vmem:[%s5800_s0 + $0xb0] ss:$36 sps:$4 sm:$0xff]  }
  0xc7   : > { %2059 = vmatmul.mubr.bf16.gmra.mrb[72].mxu1 %v4240_v20  ;;  %2156 = vmatmul.mubr.bf16.gmra.mrb[72].mxu0 %v4241_v21 }
  0xc8   : > { %2066 = vmatprep.mubr.bf16.mxu1 %v4245_v22  ;;  %2163 = vmatprep.mubr.bf16.mxu0 %v4247_v23 }
  0xcf   : > { %2067 = vmatmul.mubr.bf16.gmra.mrb[76].mxu1 %v4249_v24  ;;  %2164 = vmatmul.mubr.bf16.gmra.mrb[76].mxu0 %v4250_v25 }
  0xd0   : > { %2171 = vmatprep.mubr.bf16.mxu0 %v4251_v26  ;;  %2268 = vmatprep.mubr.bf16.mxu1 %v4255_v27 }
  0xd7   : > { %2172 = vmatmul.mubr.bf16.gmra.mrb[80].mxu0 %v4256_v29  ;;  %2269 = vmatmul.mubr.bf16.vlgmr.msra.gmra.mrb[80].mxu1 %v4253_v28  ;;  %v4311_v28 = vld [vmem:[%s5800_s0 + $0x2a0] ss:$36 sps:$4 sm:$0xff]   ;;  %v4312_v29 = vld [vmem:[%s5800_s0 + $0xf8] ss:$36 sps:$4 sm:$0xff]  }
  0xd8   : > { %2179 = vmatprep.mubr.bf16.mxu0 %v4258_v30  ;;  %2276 = vmatprep.mubr.bf16.mxu1 %v4260_v31 }
  0xdf   : > { %2180 = vmatmul.mubr.bf16.gmra.mrb[84].mxu0 %v4262_v32  ;;  %2277 = vmatmul.mubr.bf16.gmra.mrb[84].mxu1 %v4263_v33 }
  0xe0   : > { %2187 = vmatprep.mubr.bf16.mxu0 %v4264_v34  ;;  %2284 = vmatprep.mubr.bf16.mxu1 %v4266_v35  ;;  %v4313_v34 = vld [vmem:[%s5800_s0 + $0x2ec] ss:$36 sps:$4 sm:$0xff]   ;;  %v4315_v35 = vld [vmem:[%s5800_s0 + $0x140] ss:$36 sps:$4 sm:$0xff]  }
  0xe7   : > { %2188 = vmatmul.mubr.bf16.gmra.mrb[88].mxu0 %v4268_v36  ;;  %2285 = vmatmul.mubr.bf16.gmra.mrb[88].mxu1 %v4269_v37 }
  0xe8   : > { %2195 = vmatprep.mubr.bf16.mxu0 %v4271_v38  ;;  %2292 = vmatprep.mubr.bf16.mxu1 %v4273_v39 }
  0xef   : > { %2196 = vmatmul.mubr.bf16.gmra.mrb[92].mxu0 %v4275_v40  ;;  %2293 = vmatmul.mubr.bf16.gmra.mrb[92].mxu1 %v4276_v41 }
  0xf0   : > { %2203 = vmatprep.mubr.bf16.mxu0 %v4277_v42  ;;  %2300 = vmatprep.mubr.bf16.mxu1 %v4279_v43 }
  0xf7   : > { %2204 = vmatmul.mubr.bf16.gmra.mrb[96].mxu0 %v4281_v44  ;;  %2301 = vmatmul.mubr.bf16.gmra.mrb[96].mxu1 %v4282_v45  ;;  %v4316_v44 = vld [vmem:[%s5800_s0 + $0x2e8] ss:$36 sps:$4 sm:$0xff]  }
  0xf8   : > { %2211 = vmatprep.mubr.bf16.mxu0 %v4284_v46  ;;  %2308 = vmatprep.mubr.bf16.mxu1 %v4286_v47  ;;  %v4317_v45 = vld [vmem:[%s5800_s0 + $0x188] ss:$36 sps:$4 sm:$0xff]  }
  0xff   : > { %2212 = vmatmul.mubr.bf16.gmra.mrb[100].mxu0 %v4288_v48  ;;  %2309 = vmatmul.mubr.bf16.gmra.mrb[100].mxu1 %v4289_v49 }
 0x100   : > { %2219 = vmatprep.mubr.bf16.mxu0 %v4290_v50  ;;  %2316 = vmatprep.mubr.bf16.mxu1 %v4292_v51  ;;  %v4318_v50 = vld [vmem:[%s5800_s0 + $0x334] ss:$36 sps:$4 sm:$0xff]  }
 0x101   : > { %v4320_v51 = vld [vmem:[%s5800_s0 + $0x1d0] ss:$36 sps:$4 sm:$0xff]  }
 0x107   : > { %2220 = vmatmul.mubr.bf16.gmra.mrb[104].mxu0 %v4294_v52  ;;  %2317 = vmatmul.mubr.bf16.gmra.mrb[104].mxu1 %v4295_v53 }
 0x108   : > { %2227 = vmatprep.mubr.bf16.mxu0 %v4297_v54  ;;  %2324 = vmatprep.mubr.bf16.mxu1 %v4299_v55 }
 0x10a   : > { %v3588_v56 = vpop.f32.mrb[0].mxu1  ;;  %v3516_v57 = vpop.f32.mrb[0].mxu0 }
 0x10b   : > { %v3589_v58 = vpop.f32.mrb[1].mxu1  ;;  %v3517_v59 = vpop.f32.mrb[1].mxu0 }
 0x10c   : > { %v4993_v62 = vadd.f32 %v3589_v58, %v3588_v56  ;;  %v3591_v63 = vpop.f32.mrb[2].mxu1  ;;  %v4995_v0 = vadd.f32 %v3517_v59, %v3516_v57  ;;  %v3519_v1 = vpop.f32.mrb[2].mxu0 }
 0x10d   : > { %v3592_v4 = vpop.f32.mrb[3].mxu1  ;;  %v3520_v5 = vpop.f32.mrb[3].mxu0 }
 0x10e   : > { %v5003_v6 = vadd.f32 %v3592_v4, %v3591_v63  ;;  %v5005_v7 = vadd.f32 %v3520_v5, %v3519_v1  ;;  %v4323_v4 = vld [vmem:[%s5800_s0 + $0x37c] ss:$36 sps:$4 sm:$0xff]  }
 0x10f   : > { %2228 = vmatmul.mubr.bf16.gmra.mrb[108].mxu0 %v4301_v60  ;;  %2325 = vmatmul.mubr.bf16.gmra.mrb[108].mxu1 %v4302_v61  ;;  %v4321_v60 = vld [vmem:[%s5800_s0 + $0x330] ss:$36 sps:$4 sm:$0xff]   ;;  %v4322_v61 = vld [vmem:[%s5800_s0 + $0x218] ss:$36 sps:$4 sm:$0xff]   ;;  %v4325_v5 = vld [vmem:[%s5800_s0 + $0x260] ss:$36 sps:$4 sm:$0xff]  }
 0x110   : > { %2332 = vmatprep.mubr.bf16.mxu1 %v4303_v2  ;;  %3988 = vmatprep.mubr.bf16.mxu0 %v4305_v3 }
 0x112   : > { %v3594_v8 = vpop.f32.mrb[4].mxu1  ;;  %v3522_v9 = vpop.f32.mrb[4].mxu0 }
 0x113   : > { %v3595_v10 = vpop.f32.mrb[5].mxu1  ;;  %v3523_v11 = vpop.f32.mrb[5].mxu0 }
 0x114   : > { %v5013_v14 = vadd.f32 %v3595_v10, %v3594_v8  ;;  %v3597_v15 = vpop.f32.mrb[6].mxu1  ;;  %v5015_v16 = vadd.f32 %v3523_v11, %v3522_v9  ;;  %v3525_v17 = vpop.f32.mrb[6].mxu0 }
 0x115   : > { %v3598_v20 = vpop.f32.mrb[7].mxu1  ;;  %v3526_v21 = vpop.f32.mrb[7].mxu0 }
 0x116   : > { %v5023_v22 = vadd.f32 %v3598_v20, %v3597_v15  ;;  %v5025_v23 = vadd.f32 %v3526_v21, %v3525_v17  ;;  %v4326_v20 = vld [vmem:[%s5800_s0 + $0x378] ss:$36 sps:$4 sm:$0xff]  }
 0x117   : > { %2333 = vmatmul.mubr.bf16.gmra.mrb[112].mxu1 %v4306_v12  ;;  %3989 = vmatmul.mubr.bf16.vlgmr.msra.gmra.mrb[112].mxu0 %v4307_v13 }
 0x118   : > { %2340 = vmatprep.mubr.bf16.mxu1 %v4308_v18  ;;  %3992 = vmatprep.mubr.bf16.mxu0 %v4310_v19 }
 0x11a   : > { %v3600_v24 = vpop.f32.mrb[8].mxu1  ;;  %v3528_v25 = vpop.f32.mrb[8].mxu0 }
 0x11b   : > { %v3601_v26 = vpop.f32.mrb[9].mxu1  ;;  %v3529_v27 = vpop.f32.mrb[9].mxu0 }
 0x11c   : > { %v5033_v30 = vadd.f32 %v3601_v26, %v3600_v24  ;;  %v3603_v31 = vpop.f32.mrb[10].mxu1  ;;  %v5035_v32 = vadd.f32 %v3529_v27, %v3528_v25  ;;  %v3531_v33 = vpop.f32.mrb[10].mxu0  ;;  %v4328_v26 = vld [vmem:[%s5800_s0 + $0x3c4] ss:$36 sps:$4 sm:$0xff]   ;;  %v4330_v27 = vld [vmem:[%s5800_s0 + $0x2f0] ss:$36 sps:$4 sm:$0xff]  }
 0x11d   : > { %v3604_v36 = vpop.f32.mrb[11].mxu1  ;;  %v3532_v37 = vpop.f32.mrb[11].mxu0 }
 0x11e   : > { %v5043_v38 = vadd.f32 %v3604_v36, %v3603_v31  ;;  %v5045_v39 = vadd.f32 %v3532_v37, %v3531_v33 }
 0x11f   : > { %2341 = vmatmul.mubr.bf16.gmra.mrb[116].mxu1 %v4311_v28  ;;  %3993 = vmatmul.mubr.bf16.gmra.mrb[116].mxu0 %v4312_v29 }
 0x120   : > { %2348 = vmatprep.mubr.bf16.mxu1 %v4313_v34  ;;  %3996 = vmatprep.mubr.bf16.mxu0 %v4315_v35 }
 0x122   : > { %v3606_v40 = vpop.f32.mrb[12].mxu1  ;;  %v3534_v41 = vpop.f32.mrb[12].mxu0 }
 0x123   : > { %v3607_v42 = vpop.f32.mrb[13].mxu1  ;;  %v3535_v43 = vpop.f32.mrb[13].mxu0 }
 0x124   : > { %v5053_v46 = vadd.f32 %v3607_v42, %v3606_v40  ;;  %v3609_v47 = vpop.f32.mrb[14].mxu1  ;;  %v5055_v48 = vadd.f32 %v3535_v43, %v3534_v41  ;;  %v3537_v49 = vpop.f32.mrb[14].mxu0  ;;  %v4331_v42 = vld [vmem:[%s5800_s0 + $0x3c0] ss:$36 sps:$4 sm:$0xff]  }
 0x125   : > { %v3610_v52 = vpop.f32.mrb[15].mxu1  ;;  %v3538_v53 = vpop.f32.mrb[15].mxu0 }
 0x126   : > { %v5063_v54 = vadd.f32 %v3610_v52, %v3609_v47  ;;  %v5065_v55 = vadd.f32 %v3538_v53, %v3537_v49  ;;  %v4333_v47 = vld [vmem:[%s5800_s0 + $0x40c] ss:$36 sps:$4 sm:$0xff]   ;;  %v4335_v49 = vld [vmem:[%s5800_s0 + $0x380] ss:$36 sps:$4 sm:$0xff]  }
 0x127   : > { %2349 = vmatmul.mubr.bf16.gmra.mrb[120].mxu1 %v4316_v44  ;;  %3997 = vmatmul.mubr.bf16.gmra.mrb[120].mxu0 %v4317_v45 }
 0x128   : > { %2356 = vmatprep.mubr.bf16.mxu1 %v4318_v50  ;;  %4000 = vmatprep.mubr.bf16.mxu0 %v4320_v51 }
 0x12a   : > { %v3628_v56 = vpop.f32.mrb[16].mxu1  ;;  %v3540_v57 = vpop.f32.mrb[16].mxu0 }
 0x12b   : > { %v3629_v58 = vpop.f32.mrb[17].mxu1  ;;  %v3541_v59 = vpop.f32.mrb[17].mxu0 }
 0x12c   : > { %v3630_v63 = vadd.f32 %v3629_v58, %v3628_v56  ;;  %v3631_v1 = vpop.f32.mrb[18].mxu1  ;;  %v5073_v2 = vadd.f32 %v3541_v59, %v3540_v57  ;;  %v3543_v3 = vpop.f32.mrb[18].mxu0 }
 0x12d   : > { %v3632_v8 = vpop.f32.mrb[19].mxu1  ;;  %v3544_v9 = vpop.f32.mrb[19].mxu0 }
 0x12e   : > { %v5082_v10 = vadd.f32 %v3630_v63, %v4995_v0  ;;  %v3633_v11 = vadd.f32 %v3632_v8, %v3631_v1  ;;  %v5084_v12 = vadd.f32 %v3544_v9, %v3543_v3  ;;  %v4327_v0 = vld [vmem:[%s5800_s0 + $0x2a8] ss:$36 sps:$4 sm:$0xff]   ;;  %v4340_v8 = vld [vmem:[%s5800_s0 + $0x410] ss:$36 sps:$4 sm:$0xff]  }
 0x12f   : > { %2357 = vmatmul.mubr.bf16.gmra.mrb[124].mxu1 %v4321_v60  ;;  %4001 = vmatmul.mubr.bf16.gmra.mrb[124].mxu0 %v4322_v61  ;;  %v4336_v63 = vld [vmem:[%s5800_s0 + $0x408] ss:$36 sps:$4 sm:$0xff]  }
 0x130   : > { %v5087_v13 = vadd.f32 %v3633_v11, %v5005_v7  ;;  %2364 = vmatprep.mubr.bf16.mxu1 %v4323_v4  ;;  %4004 = vmatprep.mubr.bf16.mxu0 %v4325_v5  ;;  %v4338_v5 = vld [vmem:[%s5800_s0 + $0x454] ss:$36 sps:$4 sm:$0xff]  }
 0x132   : > { %v3634_v15 = vpop.f32.mrb[20].mxu1  ;;  %v3546_v17 = vpop.f32.mrb[20].mxu0 }
 0x133   : > { %v3635_v18 = vpop.f32.mrb[21].mxu1  ;;  %v3547_v19 = vpop.f32.mrb[21].mxu0 }
 0x134   : > { %v3636_v21 = vadd.f32 %v3635_v18, %v3634_v15  ;;  %v3637_v24 = vpop.f32.mrb[22].mxu1  ;;  %v5095_v25 = vadd.f32 %v3547_v19, %v3546_v17  ;;  %v3549_v7 = vpop.f32.mrb[22].mxu0 }
 0x135   : > { %v3638_v28 = vpop.f32.mrb[23].mxu1  ;;  %v3550_v29 = vpop.f32.mrb[23].mxu0 }
 0x136   : > { %v5104_v31 = vadd.f32 %v3636_v21, %v5015_v16  ;;  %v3639_v33 = vadd.f32 %v3638_v28, %v3637_v24  ;;  %v5106_v34 = vadd.f32 %v3550_v29, %v3549_v7  ;;  %v4332_v16 = vld [vmem:[%s5800_s0 + $0x338] ss:$36 sps:$4 sm:$0xff]   ;;  %v4341_v7 = vld [vmem:[%s5800_s0 + $0x450] ss:$36 sps:$4 sm:$0xff]  }
 0x137   : > { %2365 = vmatmul.mubr.bf16.gmra.mrb[128].mxu1 %v4326_v20  ;;  %4005 = vmatmul.mubr.bf16.gmra.mrb[128].mxu0 %v4327_v0 }
 0x138   : > { %v5109_v35 = vadd.f32 %v3639_v33, %v5025_v23  ;;  %2372 = vmatprep.mubr.bf16.mxu1 %v4328_v26  ;;  %4008 = vmatprep.mubr.bf16.mxu0 %v4330_v27 }
 0x13a   : > { %v3640_v36 = vpop.f32.mrb[24].mxu1  ;;  %v3552_v37 = vpop.f32.mrb[24].mxu0 }
 0x13b   : > { %v3641_v40 = vpop.f32.mrb[25].mxu1  ;;  %v3553_v41 = vpop.f32.mrb[25].mxu0 }
 0x13c   : > { %v3642_v43 = vadd.f32 %v3641_v40, %v3640_v36  ;;  %v3643_v44 = vpop.f32.mrb[26].mxu1  ;;  %v5117_v45 = vadd.f32 %v3553_v41, %v3552_v37  ;;  %v3555_v23 = vpop.f32.mrb[26].mxu0 }
 0x13d   : > { %v3644_v50 = vpop.f32.mrb[27].mxu1  ;;  %v3556_v51 = vpop.f32.mrb[27].mxu0 }
 0x13e   : > { %v5126_v52 = vadd.f32 %v3642_v43, %v5035_v32  ;;  %v3645_v53 = vadd.f32 %v3644_v50, %v3643_v44  ;;  %v5128_v56 = vadd.f32 %v3556_v51, %v3555_v23  ;;  %v4337_v32 = vld [vmem:[%s5800_s0 + $0x3c8] ss:$36 sps:$4 sm:$0xff]  }
 0x13f   : > { %2373 = vmatmul.mubr.bf16.gmra.mrb[132].mxu1 %v4331_v42  ;;  %4009 = vmatmul.mubr.bf16.gmra.mrb[132].mxu0 %v4332_v16 }
 0x140   : > { %v5131_v57 = vadd.f32 %v3645_v53, %v5045_v39  ;;  %2380 = vmatprep.mubr.bf16.mxu1 %v4333_v47  ;;  %4012 = vmatprep.mubr.bf16.mxu0 %v4335_v49 }
 0x142   : > { %v3646_v58 = vpop.f32.mrb[28].mxu1  ;;  %v3558_v59 = vpop.f32.mrb[28].mxu0 }
 0x143   : > { %v3647_v60 = vpop.f32.mrb[29].mxu1  ;;  %v3559_v61 = vpop.f32.mrb[29].mxu0 }
 0x144   : > { %v3648_v1 = vadd.f32 %v3647_v60, %v3646_v58  ;;  %v3649_v3 = vpop.f32.mrb[30].mxu1  ;;  %v5139_v4 = vadd.f32 %v3559_v61, %v3558_v59  ;;  %v3561_v39 = vpop.f32.mrb[30].mxu0 }
 0x145   : > { %v3650_v9 = vpop.f32.mrb[31].mxu1  ;;  %v3562_v11 = vpop.f32.mrb[31].mxu0 }
 0x146   : > { %v5148_v15 = vadd.f32 %v3648_v1, %v5055_v48  ;;  %v3651_v17 = vadd.f32 %v3650_v9, %v3649_v3  ;;  %v5150_v18 = vadd.f32 %v3562_v11, %v3561_v39  ;;  %v4342_v48 = vld [vmem:[%s5800_s0 + $0x458] ss:$36 sps:$4 sm:$0xff]  }
 0x147   : > { %2381 = vmatmul.mubr.bf16.gmra.mrb[136].mxu1 %v4336_v63  ;;  %4013 = vmatmul.mubr.bf16.gmra.mrb[136].mxu0 %v4337_v32 }
 0x148   : > { %v5153_v19 = vadd.f32 %v3651_v17, %v5065_v55  ;;  %2388 = vmatprep.mubr.bf16.mxu1 %v4338_v5  ;;  %4016 = vmatprep.mubr.bf16.mxu0 %v4340_v8 }
 0x14a   : > { %v3652_v20 = vpop.f32.mrb[32].mxu1  ;;  %v3564_v0 = vpop.f32.mrb[32].mxu0 }
 0x14b   : > { %v3653_v21 = vpop.f32.mrb[33].mxu1  ;;  %v3565_v24 = vpop.f32.mrb[33].mxu0 }
 0x14c   : > { %v3654_v26 = vadd.f32 %v3653_v21, %v3652_v20  ;;  %v3655_v27 = vpop.f32.mrb[34].mxu1  ;;  %v3566_v28 = vadd.f32 %v3565_v24, %v3564_v0  ;;  %v3567_v29 = vpop.f32.mrb[34].mxu0 }
 0x14d   : > { %v3656_v55 = vpop.f32.mrb[35].mxu1  ;;  %v3568_v33 = vpop.f32.mrb[35].mxu0 }
 0x14e   : > { %v5162_v36 = vadd.f32 %v3654_v26, %v5073_v2  ;;  %v3657_v37 = vadd.f32 %v3656_v55, %v3655_v27  ;;  %v3569_v40 = vadd.f32 %v3568_v33, %v3567_v29 }
 0x14f   : > { %2389 = vmatmul.mubr.bf16.gmra.mrb[140].mxu1 %v4341_v7  ;;  %4017 = vmatmul.mubr.bf16.gmra.mrb[140].mxu0 %v4342_v48 }
 0x150   : > { %v5165_v41 = vadd.f32 %v3657_v37, %v5084_v12 }
 0x152   : > { %v3658_v42 = vpop.f32.mrb[36].mxu1  ;;  %v3570_v16 = vpop.f32.mrb[36].mxu0 }
 0x153   : > { %v3659_v43 = vpop.f32.mrb[37].mxu1  ;;  %v3571_v44 = vpop.f32.mrb[37].mxu0 }
 0x154   : > { %v3660_v23 = vadd.f32 %v3659_v43, %v3658_v42  ;;  %v3661_v47 = vpop.f32.mrb[38].mxu1  ;;  %v3572_v49 = vadd.f32 %v3571_v44, %v3570_v16  ;;  %v3573_v50 = vpop.f32.mrb[38].mxu0 }
 0x155   : > { %v3662_v51 = vpop.f32.mrb[39].mxu1  ;;  %v3574_v53 = vpop.f32.mrb[39].mxu0 }
 0x156   : > { %v5168_v2 = vadd.f32 %v3660_v23, %v5095_v25  ;;  %v3663_v58 = vadd.f32 %v3662_v51, %v3661_v47  ;;  %v3575_v59 = vadd.f32 %v3574_v53, %v3573_v50 }
 0x158   : > { %v5171_v60 = vadd.f32 %v3663_v58, %v5106_v34 }
 0x15a   : > { %v3664_v12 = vpop.f32.mrb[40].mxu1  ;;  %v3576_v61 = vpop.f32.mrb[40].mxu0 }
 0x15b   : > { %v3665_v63 = vpop.f32.mrb[41].mxu1  ;;  %v3577_v32 = vpop.f32.mrb[41].mxu0 }
 0x15c   : > { %v3666_v1 = vadd.f32 %v3665_v63, %v3664_v12  ;;  %v3667_v3 = vpop.f32.mrb[42].mxu1  ;;  %v5173_v39 = vadd.f32 %v3577_v32, %v3576_v61  ;;  %v3579_v5 = vpop.f32.mrb[42].mxu0 }
 0x15d   : > { %v3668_v8 = vpop.f32.mrb[43].mxu1  ;;  %v3580_v9 = vpop.f32.mrb[43].mxu0 }
 0x15e   : > { %v5176_v11 = vadd.f32 %v3666_v1, %v5117_v45  ;;  %v3669_v25 = vadd.f32 %v3668_v8, %v3667_v3  ;;  %v3581_v17 = vadd.f32 %v3580_v9, %v3579_v5 }
 0x160   : > { %v5179_v20 = vadd.f32 %v3669_v25, %v5128_v56 }
 0x162   : > { %v3670_v34 = vpop.f32.mrb[44].mxu1  ;;  %v3582_v0 = vpop.f32.mrb[44].mxu0 }
 0x163   : > { %v3671_v21 = vpop.f32.mrb[45].mxu1  ;;  %v3583_v24 = vpop.f32.mrb[45].mxu0 }
 0x164   : > { %v3672_v7 = vadd.f32 %v3671_v21, %v3670_v34  ;;  %v3673_v48 = vpop.f32.mrb[46].mxu1  ;;  %v5181_v26 = vadd.f32 %v3583_v24, %v3582_v0  ;;  %v3585_v27 = vpop.f32.mrb[46].mxu0 }
 0x165   : > { %v3674_v29 = vpop.f32.mrb[47].mxu1  ;;  %v3586_v55 = vpop.f32.mrb[47].mxu0 }
 0x166   : > { %v5184_v33 = vadd.f32 %v3672_v7, %v5139_v4  ;;  %v3675_v45 = vadd.f32 %v3674_v29, %v3673_v48  ;;  %v5186_v37 = vadd.f32 %v3586_v55, %v3585_v27 }
 0x168   : > { %v5189_v56 = vadd.f32 %v3675_v45, %v5150_v18 }
 0x16a   : > { %v3676_v42 = vpop.f32.mrb[48].mxu1  ;;  %v3740_v16 = vpop.f32.mrb[48].mxu0 }
 0x16b   : > { %v3677_v43 = vpop.f32.mrb[49].mxu1  ;;  %v3741_v44 = vpop.f32.mrb[49].mxu0 }
 0x16c   : > { %v3678_v23 = vadd.f32 %v3677_v43, %v3676_v42  ;;  %v3742_v47 = vadd.f32 %v3741_v44, %v3740_v16  ;;  %v3679_v50 = vpop.f32.mrb[50].mxu1  ;;  %v3743_v51 = vpop.f32.mrb[50].mxu0 }
 0x16d   : > { %v3680_v53 = vpop.f32.mrb[51].mxu1  ;;  %v3744_v58 = vpop.f32.mrb[51].mxu0 }
 0x16e   : > { %v5191_v12 = vadd.f32 %v3678_v23, %v3566_v28  ;;  %v5194_v4 = vadd.f32 %v3742_v47, %v5082_v10  ;;  %v3681_v61 = vadd.f32 %v3680_v53, %v3679_v50  ;;  %v3745_v63 = vadd.f32 %v3744_v58, %v3743_v51 }
 0x170   : > { %v5196_v32 = vadd.f32 %v3681_v61, %v3569_v40  ;;  %v5199_v18 = vadd.f32 %v3745_v63, %v5087_v13 }
 0x172   : > { %v3682_v1 = vpop.f32.mrb[52].mxu1  ;;  %v3746_v3 = vpop.f32.mrb[52].mxu0 }
 0x173   : > { %v3683_v5 = vpop.f32.mrb[53].mxu1  ;;  %v3747_v8 = vpop.f32.mrb[53].mxu0 }
 0x174   : > { %v3684_v9 = vadd.f32 %v3683_v5, %v3682_v1  ;;  %v3748_v25 = vadd.f32 %v3747_v8, %v3746_v3  ;;  %v3685_v34 = vpop.f32.mrb[54].mxu1  ;;  %v3749_v0 = vpop.f32.mrb[54].mxu0 }
 0x175   : > { %v3686_v28 = vpop.f32.mrb[55].mxu1  ;;  %v3750_v21 = vpop.f32.mrb[55].mxu0 }
 0x176   : > { %v5201_v24 = vadd.f32 %v3684_v9, %v3572_v49  ;;  %v5204_v10 = vadd.f32 %v3748_v25, %v5104_v31  ;;  %v3687_v40 = vadd.f32 %v3686_v28, %v3685_v34  ;;  %v3751_v7 = vadd.f32 %v3750_v21, %v3749_v0 }
 0x178   : > { %v5206_v48 = vadd.f32 %v3687_v40, %v3575_v59  ;;  %v5209_v13 = vadd.f32 %v3751_v7, %v5109_v35 }
 0x17a   : > { %v3688_v27 = vpop.f32.mrb[56].mxu1  ;;  %v3752_v29 = vpop.f32.mrb[56].mxu0 }
 0x17b   : > { %v3689_v55 = vpop.f32.mrb[57].mxu1  ;;  %v3753_v45 = vpop.f32.mrb[57].mxu0 }
 0x17c   : > { %v3690_v42 = vadd.f32 %v3689_v55, %v3688_v27  ;;  %v3754_v16 = vadd.f32 %v3753_v45, %v3752_v29  ;;  %v3691_v43 = vpop.f32.mrb[58].mxu1  ;;  %v3755_v44 = vpop.f32.mrb[58].mxu0 }
 0x17d   : > { %v3692_v49 = vpop.f32.mrb[59].mxu1  ;;  %v3756_v23 = vpop.f32.mrb[59].mxu0 }
 0x17e   : > { %v5212_v31 = vadd.f32 %v3690_v42, %v5173_v39  ;;  %v5215_v47 = vadd.f32 %v3754_v16, %v5126_v52  ;;  %v3693_v59 = vadd.f32 %v3692_v49, %v3691_v43  ;;  %v3757_v50 = vadd.f32 %v3756_v23, %v3755_v44 }
 0x180   : > { %v5217_v35 = vadd.f32 %v3693_v59, %v3581_v17  ;;  %v5220_v51 = vadd.f32 %v3757_v50, %v5131_v57 }
 0x182   : > { %v3694_v53 = vpop.f32.mrb[60].mxu1  ;;  %v3758_v58 = vpop.f32.mrb[60].mxu0 }
 0x183   : > { %v3695_v61 = vpop.f32.mrb[61].mxu1  ;;  %v3759_v63 = vpop.f32.mrb[61].mxu0 }
 0x184   : > { %v3696_v1 = vadd.f32 %v3695_v61, %v3694_v53  ;;  %v3760_v3 = vadd.f32 %v3759_v63, %v3758_v58  ;;  %v3697_v5 = vpop.f32.mrb[62].mxu1  ;;  %v3761_v8 = vpop.f32.mrb[62].mxu0 }
 0x185   : > { %v3698_v39 = vpop.f32.mrb[63].mxu1  ;;  %v3762_v9 = vpop.f32.mrb[63].mxu0 }
 0x186   : > { %v5223_v52 = vadd.f32 %v3696_v1, %v5181_v26  ;;  %v5226_v25 = vadd.f32 %v3760_v3, %v5148_v15  ;;  %v3699_v17 = vadd.f32 %v3698_v39, %v3697_v5  ;;  %v3763_v34 = vadd.f32 %v3762_v9, %v3761_v8 }
 0x188   : > { %v5229_v57 = vadd.f32 %v3699_v17, %v5186_v37  ;;  %v5232_v0 = vadd.f32 %v3763_v34, %v5153_v19 }
 0x18a   : > { %v3700_v28 = vpop.f32.mrb[64].mxu1  ;;  %v3764_v21 = vpop.f32.mrb[64].mxu0 }
 0x18b   : > { %v3701_v40 = vpop.f32.mrb[65].mxu1  ;;  %v3765_v7 = vpop.f32.mrb[65].mxu0 }
 0x18c   : > { %v3702_v27 = vadd.f32 %v3701_v40, %v3700_v28  ;;  %v3766_v29 = vadd.f32 %v3765_v7, %v3764_v21  ;;  %v3703_v55 = vpop.f32.mrb[66].mxu1  ;;  %v3767_v26 = vpop.f32.mrb[66].mxu0 }
 0x18d   : > { %v3704_v45 = vpop.f32.mrb[67].mxu1  ;;  %v3768_v42 = vpop.f32.mrb[67].mxu0 }
 0x18e   : > { %v5235_v15 = vadd.f32 %v3702_v27, %v4993_v62  ;;  %v5238_v16 = vadd.f32 %v3766_v29, %v5162_v36  ;;  %v3705_v37 = vadd.f32 %v3704_v45, %v3703_v55  ;;  %v3769_v43 = vadd.f32 %v3768_v42, %v3767_v26 }
 0x190   : > { %v5241_v19 = vadd.f32 %v3705_v37, %v5003_v6  ;;  %v5244_v44 = vadd.f32 %v3769_v43, %v5165_v41 }
 0x192   : > { %v3706_v49 = vpop.f32.mrb[68].mxu1  ;;  %v3770_v23 = vpop.f32.mrb[68].mxu0 }
 0x193   : > { %v3707_v59 = vpop.f32.mrb[69].mxu1  ;;  %v3771_v50 = vpop.f32.mrb[69].mxu0 }
 0x194   : > { %v3708_v53 = vadd.f32 %v3707_v59, %v3706_v49  ;;  %v3772_v58 = vadd.f32 %v3771_v50, %v3770_v23  ;;  %v3709_v61 = vpop.f32.mrb[70].mxu1  ;;  %v3773_v62 = vpop.f32.mrb[70].mxu0 }
 0x195   : > { %v3710_v63 = vpop.f32.mrb[71].mxu1  ;;  %v3774_v1 = vpop.f32.mrb[71].mxu0 }
 0x196   : > { %v5247_v36 = vadd.f32 %v3708_v53, %v5013_v14  ;;  %v5250_v3 = vadd.f32 %v3772_v58, %v5168_v2  ;;  %v3711_v6 = vadd.f32 %v3710_v63, %v3709_v61  ;;  %v3775_v5 = vadd.f32 %v3774_v1, %v3773_v62 }
 0x198   : > { %v5253_v41 = vadd.f32 %v3711_v6, %v5023_v22  ;;  %v5256_v8 = vadd.f32 %v3775_v5, %v5171_v60 }
 0x19a   : > { %v3712_v39 = vpop.f32.mrb[72].mxu1  ;;  %v3776_v9 = vpop.f32.mrb[72].mxu0 }
 0x19b   : > { %v3713_v17 = vpop.f32.mrb[73].mxu1  ;;  %v3777_v34 = vpop.f32.mrb[73].mxu0 }
 0x19c   : > { %v3714_v28 = vadd.f32 %v3713_v17, %v3712_v39  ;;  %v3778_v21 = vadd.f32 %v3777_v34, %v3776_v9  ;;  %v3715_v40 = vpop.f32.mrb[74].mxu1  ;;  %v3779_v14 = vpop.f32.mrb[74].mxu0 }
 0x19d   : > { %v3716_v7 = vpop.f32.mrb[75].mxu1  ;;  %v3780_v27 = vpop.f32.mrb[75].mxu0 }
 0x19e   : > { %v5259_v2 = vadd.f32 %v3714_v28, %v5033_v30  ;;  %v5262_v29 = vadd.f32 %v3778_v21, %v5176_v11  ;;  %v3717_v22 = vadd.f32 %v3716_v7, %v3715_v40  ;;  %v3781_v55 = vadd.f32 %v3780_v27, %v3779_v14 }
 0x1a0   : > { %v5265_v60 = vadd.f32 %v3717_v22, %v5043_v38  ;;  %v5268_v26 = vadd.f32 %v3781_v55, %v5179_v20 }
 0x1a2   : > { %v3718_v45 = vpop.f32.mrb[76].mxu1  ;;  %v3782_v42 = vpop.f32.mrb[76].mxu0 }
 0x1a3   : > { %v3719_v37 = vpop.f32.mrb[77].mxu1  ;;  %v3783_v43 = vpop.f32.mrb[77].mxu0 }
 0x1a4   : > { %v3720_v49 = vadd.f32 %v3719_v37, %v3718_v45  ;;  %v3784_v23 = vadd.f32 %v3783_v43, %v3782_v42  ;;  %v3721_v59 = vpop.f32.mrb[78].mxu1  ;;  %v3785_v30 = vpop.f32.mrb[78].mxu0 }
 0x1a5   : > { %v3722_v50 = vpop.f32.mrb[79].mxu1  ;;  %v3786_v53 = vpop.f32.mrb[79].mxu0 }
 0x1a6   : > { %v5271_v11 = vadd.f32 %v3720_v49, %v5053_v46  ;;  %v5274_v58 = vadd.f32 %v3784_v23, %v5184_v33  ;;  %v3723_v38 = vadd.f32 %v3722_v50, %v3721_v59  ;;  %v3787_v61 = vadd.f32 %v3786_v53, %v3785_v30 }
 0x1a8   : > { %v5277_v20 = vadd.f32 %v3723_v38, %v5063_v54  ;;  %v5280_v62 = vadd.f32 %v3787_v61, %v5189_v56 }
 0x1aa   : > { %v3788_v63 = vpop.f32.mrb[80].mxu0  ;;  %v3852_v1 = vpop.f32.mrb[80].mxu1 }
 0x1ab   : > { %v3789_v6 = vpop.f32.mrb[81].mxu0  ;;  %v3853_v5 = vpop.f32.mrb[81].mxu1 }
 0x1ac   : > { %v3790_v39 = vadd.f32 %v3789_v6, %v3788_v63  ;;  %v3854_v9 = vadd.f32 %v3853_v5, %v3852_v1  ;;  %v3791_v17 = vpop.f32.mrb[82].mxu0  ;;  %v3855_v46 = vpop.f32.mrb[82].mxu1 }
 0x1ad   : > { %v3792_v34 = vpop.f32.mrb[83].mxu0  ;;  %v3856_v28 = vpop.f32.mrb[83].mxu1 }
 0x1ae   : > { %v5283_v33 = vadd.f32 %v3790_v39, %v5191_v12  ;;  %v3793_v21 = vadd.f32 %v3792_v34, %v3791_v17  ;;  %v3857_v40 = vadd.f32 %v3856_v28, %v3855_v46  ;;  %v5286_v54 = vadd.f32 %v3854_v9, %v5194_v4 }
 0x1b0   : > { %v5289_v56 = vadd.f32 %v3793_v21, %v5196_v32  ;;  %v5292_v14 = vadd.f32 %v3857_v40, %v5199_v18 }
 0x1b2   : > { %v3794_v7 = vpop.f32.mrb[84].mxu0  ;;  %v3858_v27 = vpop.f32.mrb[84].mxu1 }
 0x1b3   : > { %v3795_v22 = vpop.f32.mrb[85].mxu0  ;;  %v3859_v55 = vpop.f32.mrb[85].mxu1 }
 0x1b4   : > { %v3796_v45 = vadd.f32 %v3795_v22, %v3794_v7  ;;  %v3860_v42 = vadd.f32 %v3859_v55, %v3858_v27  ;;  %v3797_v37 = vpop.f32.mrb[86].mxu0  ;;  %v3861_v12 = vpop.f32.mrb[86].mxu1 }
 0x1b5   : > { %v3798_v43 = vpop.f32.mrb[87].mxu0  ;;  %v3862_v49 = vpop.f32.mrb[87].mxu1 }
 0x1b6   : > { %v5295_v23 = vadd.f32 %v3796_v45, %v5201_v24  ;;  %v3799_v4 = vadd.f32 %v3798_v43, %v3797_v37  ;;  %v3863_v59 = vadd.f32 %v3862_v49, %v3861_v12  ;;  %v5298_v32 = vadd.f32 %v3860_v42, %v5204_v10 }
 0x1b8   : > { %v5301_v18 = vadd.f32 %v3799_v4, %v5206_v48  ;;  %v5304_v30 = vadd.f32 %v3863_v59, %v5209_v13 }
 0x1ba   : > { %v3800_v50 = vpop.f32.mrb[88].mxu0  ;;  %v3864_v53 = vpop.f32.mrb[88].mxu1 }
 0x1bb   : > { %v3801_v38 = vpop.f32.mrb[89].mxu0  ;;  %v3865_v61 = vpop.f32.mrb[89].mxu1 }
 0x1bc   : > { %v3802_v63 = vadd.f32 %v3801_v38, %v3800_v50  ;;  %v3866_v1 = vadd.f32 %v3865_v61, %v3864_v53  ;;  %v3803_v6 = vpop.f32.mrb[90].mxu0  ;;  %v3867_v24 = vpop.f32.mrb[90].mxu1 }
 0x1bd   : > { %v3804_v5 = vpop.f32.mrb[91].mxu0  ;;  %v3868_v39 = vpop.f32.mrb[91].mxu1 }
 0x1be   : > { %v5307_v9 = vadd.f32 %v3802_v63, %v5212_v31  ;;  %v3805_v10 = vadd.f32 %v3804_v5, %v3803_v6  ;;  %v3869_v17 = vadd.f32 %v3868_v39, %v3867_v24  ;;  %v5310_v48 = vadd.f32 %v3866_v1, %v5215_v47 }
 0x1c0   : > { %v5313_v13 = vadd.f32 %v3805_v10, %v5217_v35  ;;  %v5316_v46 = vadd.f32 %v3869_v17, %v5220_v51 }
 0x1c2   : > { %v3806_v34 = vpop.f32.mrb[92].mxu0  ;;  %v3870_v28 = vpop.f32.mrb[92].mxu1 }
 0x1c3   : > { %v3807_v21 = vpop.f32.mrb[93].mxu0  ;;  %v3871_v40 = vpop.f32.mrb[93].mxu1 }
 0x1c4   : > { %v3808_v7 = vadd.f32 %v3807_v21, %v3806_v34  ;;  %v3872_v27 = vadd.f32 %v3871_v40, %v3870_v28  ;;  %v3809_v22 = vpop.f32.mrb[94].mxu0  ;;  %v3873_v31 = vpop.f32.mrb[94].mxu1 }
 0x1c5   : > { %v3810_v55 = vpop.f32.mrb[95].mxu0  ;;  %v3874_v45 = vpop.f32.mrb[95].mxu1 }
 0x1c6   : > { %v5319_v42 = vadd.f32 %v3808_v7, %v5223_v52  ;;  %v3811_v47 = vadd.f32 %v3810_v55, %v3809_v22  ;;  %v3875_v37 = vadd.f32 %v3874_v45, %v3873_v31  ;;  %v5322_v35 = vadd.f32 %v3872_v27, %v5226_v25 }
 0x1c8   : > { %v5325_v51 = vadd.f32 %v3811_v47, %v5229_v57  ;;  %v5328_v12 = vadd.f32 %v3875_v37, %v5232_v0 }
 0x1ca   : > { %v3812_v43 = vpop.f32.mrb[96].mxu0  ;;  %v3876_v49 = vpop.f32.mrb[96].mxu1 }
 0x1cb   : > { %v3813_v4 = vpop.f32.mrb[97].mxu0  ;;  %v3877_v59 = vpop.f32.mrb[97].mxu1 }
 0x1cc   : > { %v3814_v50 = vadd.f32 %v3813_v4, %v3812_v43  ;;  %v3878_v53 = vadd.f32 %v3877_v59, %v3876_v49  ;;  %v3815_v38 = vpop.f32.mrb[98].mxu0  ;;  %v3879_v52 = vpop.f32.mrb[98].mxu1 }
 0x1cd   : > { %v3816_v61 = vpop.f32.mrb[99].mxu0  ;;  %v3880_v63 = vpop.f32.mrb[99].mxu1 }
 0x1ce   : > { %v5331_v1 = vadd.f32 %v3814_v50, %v5235_v15  ;;  %v3817_v25 = vadd.f32 %v3816_v61, %v3815_v38  ;;  %v3881_v6 = vadd.f32 %v3880_v63, %v3879_v52  ;;  %v5334_v57 = vadd.f32 %v3878_v53, %v5238_v16 }
 0x1d0   : > { %v5337_v0 = vadd.f32 %v3817_v25, %v5241_v19  ;;  %v5340_v24 = vadd.f32 %v3881_v6, %v5244_v44 }
 0x1d2   : > { %v3818_v5 = vpop.f32.mrb[100].mxu0  ;;  %v3882_v39 = vpop.f32.mrb[100].mxu1 }
 0x1d3   : > { %v3819_v10 = vpop.f32.mrb[101].mxu0  ;;  %v3883_v17 = vpop.f32.mrb[101].mxu1 }
 0x1d4   : > { %v3820_v34 = vadd.f32 %v3819_v10, %v3818_v5  ;;  %v3884_v28 = vadd.f32 %v3883_v17, %v3882_v39  ;;  %v3821_v21 = vpop.f32.mrb[102].mxu0  ;;  %v3885_v15 = vpop.f32.mrb[102].mxu1 }
 0x1d5   : > { %v3822_v40 = vpop.f32.mrb[103].mxu0  ;;  %v3886_v7 = vpop.f32.mrb[103].mxu1 }
 0x1d6   : > { %v5343_v27 = vadd.f32 %v3820_v34, %v5247_v36  ;;  %v3823_v16 = vadd.f32 %v3822_v40, %v3821_v21  ;;  %v3887_v22 = vadd.f32 %v3886_v7, %v3885_v15  ;;  %v5346_v19 = vadd.f32 %v3884_v28, %v5250_v3 }
 0x1d8   : > { %v5349_v44 = vadd.f32 %v3823_v16, %v5253_v41  ;;  %v5352_v31 = vadd.f32 %v3887_v22, %v5256_v8 }
 0x1da   : > { %v3824_v55 = vpop.f32.mrb[104].mxu0  ;;  %v3888_v45 = vpop.f32.mrb[104].mxu1 }
 0x1db   : > { %v3825_v47 = vpop.f32.mrb[105].mxu0  ;;  %v3889_v37 = vpop.f32.mrb[105].mxu1 }
 0x1dc   : > { %v3826_v43 = vadd.f32 %v3825_v47, %v3824_v55  ;;  %v3890_v49 = vadd.f32 %v3889_v37, %v3888_v45  ;;  %v3827_v4 = vpop.f32.mrb[106].mxu0  ;;  %v3891_v36 = vpop.f32.mrb[106].mxu1 }
 0x1dd   : > { %v3828_v59 = vpop.f32.mrb[107].mxu0  ;;  %v3892_v50 = vpop.f32.mrb[107].mxu1 }
 0x1de   : > { %v5355_v53 = vadd.f32 %v3826_v43, %v5259_v2  ;;  %v3829_v3 = vadd.f32 %v3828_v59, %v3827_v4  ;;  %v3893_v38 = vadd.f32 %v3892_v50, %v3891_v36  ;;  %v5358_v41 = vadd.f32 %v3890_v49, %v5262_v29 }
 0x1e0   : > { %v5361_v8 = vadd.f32 %v3829_v3, %v5265_v60  ;;  %v5364_v52 = vadd.f32 %v3893_v38, %v5268_v26 }
 0x1e2   : > { %v3830_v61 = vpop.f32.mrb[108].mxu0  ;;  %v3894_v63 = vpop.f32.mrb[108].mxu1 }
 0x1e3   : > { %v3831_v25 = vpop.f32.mrb[109].mxu0  ;;  %v3895_v6 = vpop.f32.mrb[109].mxu1 }
 0x1e4   : > { %v3832_v5 = vadd.f32 %v3831_v25, %v3830_v61  ;;  %v3896_v39 = vadd.f32 %v3895_v6, %v3894_v63  ;;  %v3833_v10 = vpop.f32.mrb[110].mxu0  ;;  %v3897_v2 = vpop.f32.mrb[110].mxu1 }
 0x1e5   : > { %v3834_v17 = vpop.f32.mrb[111].mxu0  ;;  %v3898_v34 = vpop.f32.mrb[111].mxu1 }
 0x1e6   : > { %v5367_v28 = vadd.f32 %v3832_v5, %v5271_v11  ;;  %v3835_v29 = vadd.f32 %v3834_v17, %v3833_v10  ;;  %v3899_v21 = vadd.f32 %v3898_v34, %v3897_v2  ;;  %v2327_v60 = vadd.f32 %v3896_v39, %v5274_v58 }
 0x1e8   : > { %v5371_v26 = vadd.f32 %v3835_v29, %v5277_v20  ;;  %v2330_v15 = vadd.f32 %v3899_v21, %v5280_v62 }
 0x1ea   : > { %v3900_v40 = vpop.f32.mrb[112].mxu1  ;;  %v3990_v7 = vpop.f32.mrb[112].mxu0 }
 0x1eb   : > { %v5375_v16 = vadd.f32 %v3990_v7, %v5298_v32  ;;  %v3901_v22 = vpop.f32.mrb[113].mxu1  ;;  %v2431_v55 = vpop.f32.mrb[113].mxu0 }
 0x1ec   : > { %v3902_v45 = vadd.f32 %v3901_v22, %v3900_v40  ;;  %v5378_v11 = vadd.f32 %v2431_v55, %v5286_v54  ;;  %v3903_v47 = vpop.f32.mrb[114].mxu1  ;;  %v3991_v37 = vpop.f32.mrb[114].mxu0 }
 0x1ed   : > { %v5381_v58 = vadd.f32 %v3991_v37, %v5304_v30  ;;  %v3904_v20 = vpop.f32.mrb[115].mxu1  ;;  %v2434_v43 = vpop.f32.mrb[115].mxu0 }
 0x1ee   : > { %v3905_v49 = vadd.f32 %v3904_v20, %v3903_v47  ;;  %v5384_v62 = vadd.f32 %v2434_v43, %v5292_v14  ;;  %v2335_v32 = vadd.f32 %v3902_v45, %v5283_v33 }
 0x1f0   : > { %v2338_v4 = vadd.f32 %v3905_v49, %v5289_v56 }
 0x1f2   : > { %v3906_v36 = vpop.f32.mrb[116].mxu1  ;;  %v3994_v59 = vpop.f32.mrb[116].mxu0 }
 0x1f3   : > { %v5389_v54 = vadd.f32 %v3994_v59, %v5322_v35  ;;  %v3907_v50 = vpop.f32.mrb[117].mxu1  ;;  %v2447_v3 = vpop.f32.mrb[117].mxu0 }
 0x1f4   : > { %v3908_v38 = vadd.f32 %v3907_v50, %v3906_v36  ;;  %v5392_v30 = vadd.f32 %v2447_v3, %v5310_v48  ;;  %v3909_v61 = vpop.f32.mrb[118].mxu1  ;;  %v3995_v63 = vpop.f32.mrb[118].mxu0 }
 0x1f5   : > { %v5395_v14 = vadd.f32 %v3995_v63, %v5328_v12  ;;  %v3910_v25 = vpop.f32.mrb[119].mxu1  ;;  %v2450_v33 = vpop.f32.mrb[119].mxu0 }
 0x1f6   : > { %v3911_v6 = vadd.f32 %v3910_v25, %v3909_v61  ;;  %v5398_v56 = vadd.f32 %v2450_v33, %v5316_v46  ;;  %v2343_v35 = vadd.f32 %v3908_v38, %v5295_v23 }
 0x1f8   : > { %v2346_v5 = vadd.f32 %v3911_v6, %v5301_v18 }
 0x1fa   : > { %v3912_v39 = vpop.f32.mrb[120].mxu1  ;;  %v3998_v10 = vpop.f32.mrb[120].mxu0 }
 0x1fb   : > { %v5403_v48 = vadd.f32 %v3998_v10, %v5346_v19  ;;  %v3913_v2 = vpop.f32.mrb[121].mxu1  ;;  %v2463_v17 = vpop.f32.mrb[121].mxu0 }
 0x1fc   : > { %v3914_v34 = vadd.f32 %v3913_v2, %v3912_v39  ;;  %v5406_v12 = vadd.f32 %v2463_v17, %v5334_v57  ;;  %v3915_v29 = vpop.f32.mrb[122].mxu1  ;;  %v3999_v21 = vpop.f32.mrb[122].mxu0 }
 0x1fd   : > { %v5409_v46 = vadd.f32 %v3999_v21, %v5352_v31  ;;  %v3916_v40 = vpop.f32.mrb[123].mxu1  ;;  %v2466_v23 = vpop.f32.mrb[123].mxu0 }
 0x1fe   : > { %v3917_v7 = vadd.f32 %v3916_v40, %v3915_v29  ;;  %v5412_v18 = vadd.f32 %v2466_v23, %v5340_v24  ;;  %v2351_v19 = vadd.f32 %v3914_v34, %v5307_v9 }
 0x200   : > { %v2354_v22 = vadd.f32 %v3917_v7, %v5313_v13 }
 0x202   : > { %v3918_v55 = vpop.f32.mrb[124].mxu1  ;;  %v4002_v45 = vpop.f32.mrb[124].mxu0 }
 0x203   : > { %v5416_v47 = vadd.f32 %v4002_v45, %v2327_v60  ;;  %v3919_v57 = vpop.f32.mrb[125].mxu1  ;;  %v2479_v37 = vpop.f32.mrb[125].mxu0 }
 0x204   : > { %v3920_v20 = vadd.f32 %v3919_v57, %v3918_v55  ;;  %v5419_v31 = vadd.f32 %v2479_v37, %v5358_v41  ;;  %v3921_v43 = vpop.f32.mrb[126].mxu1  ;;  %v4003_v49 = vpop.f32.mrb[126].mxu0 }
 0x205   : > { %v5421_v36 = vadd.f32 %v4003_v49, %v2330_v15  ;;  %v3922_v24 = vpop.f32.mrb[127].mxu1  ;;  %v2482_v59 = vpop.f32.mrb[127].mxu0 }
 0x206   : > { %v3923_v50 = vadd.f32 %v3922_v24, %v3921_v43  ;;  %v5424_v9 = vadd.f32 %v2482_v59, %v5364_v52  ;;  %v2359_v13 = vadd.f32 %v3920_v20, %v5319_v42 }
 0x208   : > { %v2362_v60 = vadd.f32 %v3923_v50, %v5325_v51 }
 0x20a   : > { %v3924_v3 = vpop.f32.mrb[128].mxu1  ;;  %v4006_v38 = vpop.f32.mrb[128].mxu0 }
 0x20b   : > { %v5428_v61 = vadd.f32 %v4006_v38, %v2343_v35  ;;  %v3925_v41 = vpop.f32.mrb[129].mxu1  ;;  %v2495_v63 = vpop.f32.mrb[129].mxu0 }
 0x20c   : > { %v3926_v25 = vadd.f32 %v3925_v41, %v3924_v3  ;;  %v5430_v33 = vadd.f32 %v2495_v63, %v2335_v32  ;;  %v3927_v15 = vpop.f32.mrb[130].mxu1  ;;  %v4007_v6 = vpop.f32.mrb[130].mxu0 }
 0x20d   : > { %v5432_v39 = vadd.f32 %v4007_v6, %v2346_v5  ;;  %v3928_v10 = vpop.f32.mrb[131].mxu1  ;;  %v2498_v52 = vpop.f32.mrb[131].mxu0 }
 0x20e   : > { %v3929_v2 = vadd.f32 %v3928_v10, %v3927_v15  ;;  %v5434_v17 = vadd.f32 %v2498_v52, %v2338_v4  ;;  %v2367_v42 = vadd.f32 %v3926_v25, %v5331_v1 }
 0x210   : > { %v2370_v51 = vadd.f32 %v3929_v2, %v5337_v0 }
 0x212   : > { %v3930_v35 = vpop.f32.mrb[132].mxu1  ;;  %v4010_v34 = vpop.f32.mrb[132].mxu0 }
 0x213   : > { %v5438_v29 = vadd.f32 %v4010_v34, %v2359_v13  ;;  %v3931_v21 = vpop.f32.mrb[133].mxu1  ;;  %v2511_v32 = vpop.f32.mrb[133].mxu0 }
 0x214   : > { %v3932_v40 = vadd.f32 %v3931_v21, %v3930_v35  ;;  %v5440_v23 = vadd.f32 %v2511_v32, %v2351_v19  ;;  %v3933_v5 = vpop.f32.mrb[134].mxu1  ;;  %v4011_v7 = vpop.f32.mrb[134].mxu0 }
 0x215   : > { %v5442_v55 = vadd.f32 %v4011_v7, %v2362_v60  ;;  %v3934_v45 = vpop.f32.mrb[135].mxu1  ;;  %v2514_v4 = vpop.f32.mrb[135].mxu0  ;;  %v2562_v7 = vadd.f32 (!%p3492_p5), %v5384_v62, %v5378_v11 }
 0x216   : > { %v3935_v57 = vadd.f32 %v3934_v45, %v3933_v5  ;;  %v5444_v37 = vadd.f32 %v2514_v4, %v2354_v22  ;;  %v2375_v1 = vadd.f32 %v3932_v40, %v5343_v27 }
 0x217   : > { %v2563_v45 = vadd.f32 (!%p3492_p5), %v2562_v7, %v5375_v16 }
 0x218   : > { %v2378_v0 = vadd.f32 %v3935_v57, %v5349_v44  ;;  %v2603_v57 = vmul.f32 (!%p3492_p5), %v5384_v62, %v5384_v62 }
 0x219   : > { %v2564_v4 = vadd.f32 (!%p3492_p5), %v2563_v45, %v5381_v58  ;;  %v2613_v45 = vmul.f32 (!%p3492_p5), %v5409_v46, %v5409_v46 }
 0x21a   : > { %v3936_v20 = vpop.f32.mrb[136].mxu1  ;;  %v4014_v43 = vpop.f32.mrb[136].mxu0 }
 0x21b   : > { %v5448_v49 = vadd.f32 %v4014_v43, %v2375_v1  ;;  %v3937_v24 = vpop.f32.mrb[137].mxu1  ;;  %v2527_v19 = vpop.f32.mrb[137].mxu0  ;;  %v2604_v1 = vmul.f32 (!%p3492_p5), %v5375_v16, %v5375_v16 }
 0x21c   : > { %v3938_v59 = vadd.f32 %v3937_v24, %v3936_v20  ;;  %v5450_v50 = vadd.f32 %v2527_v19, %v2367_v42  ;;  %v3939_v13 = vpop.f32.mrb[138].mxu1  ;;  %v4015_v60 = vpop.f32.mrb[138].mxu0  ;;  %v2605_v20 = vmul.f32 (!%p3492_p5), %v5381_v58, %v5381_v58  ;;  %v4380_v19 = vmov (!%p3492_p5), 0.0  }
 0x21d   : > { %v5452_v3 = vadd.f32 %v4015_v60, %v2378_v0  ;;  %v3940_v38 = vpop.f32.mrb[139].mxu1  ;;  %v2530_v22 = vpop.f32.mrb[139].mxu0  ;;  %2673 = vst [vmem:[%s5806_s6] sm:$0xff] (!%p3492_p5), %v4380_v19  ;;  %2674 = vst [vmem:[%s5806_s6 + $0x8] sm:$0xff] (!%p3492_p5), %v4380_v19 }
 0x21e   : > { %v3941_v41 = vadd.f32 %v3940_v38, %v3939_v13  ;;  %v5454_v63 = vadd.f32 %v2530_v22, %v2370_v51  ;;  %v2383_v27 = vadd.f32 %v3938_v59, %v5355_v53  ;;  %v2606_v59 = vmul.f32 (!%p3492_p5), %v5392_v30, %v5392_v30 }
 0x21f   : > { %v2607_v38 = vmul.f32 (!%p3492_p5), %v5398_v56, %v5398_v56 }
 0x220   : > { %v2386_v44 = vadd.f32 %v3941_v41, %v5361_v8 }
 0x222   : > { %v3942_v25 = vpop.f32.mrb[140].mxu1  ;;  %v4018_v15 = vpop.f32.mrb[140].mxu0 }
 0x223   : > { %v3943_v6 = vpop.f32.mrb[141].mxu1  ;;  %v2543_v10 = vpop.f32.mrb[141].mxu0 }
 0x224   : > { %v3944_v52 = vadd.f32 %v3943_v6, %v3942_v25  ;;  %v5458_v2 = vadd.f32 %v2543_v10, %v2383_v27  ;;  %v3945_v42 = vpop.f32.mrb[142].mxu1  ;;  %v4019_v35 = vpop.f32.mrb[142].mxu0  ;;  %2560 = sbr.rel (%p3492_p5) target bundleno = 629 (0x275), region = 52  ;;  %v2608_v27 = vmul.f32 (!%p3492_p5), %v5389_v54, %v5389_v54 }
 0x225   : > { %v3946_v34 = vpop.f32.mrb[143].mxu1  ;;  %v2546_v21 = vpop.f32.mrb[143].mxu0 }
 0x226   : > { %v2391_v32 = vadd.f32 %v3944_v52, %v5367_v28  ;;  %v3947_v40 = vadd.f32 %v3946_v34, %v3945_v42  ;;  %v5461_v51 = vadd.f32 %v2546_v21, %v2386_v44  ;;  %v2602_v28 = vmul.f32 (!%p3492_p5), %v5378_v11, %v5378_v11 }
 0x227   : > { %v2610_v52 = vmul.f32 (!%p3492_p5), %v5406_v12, %v5406_v12  ;;  %v2611_v34 = vmul.f32 (!%p3492_p5), %v5412_v18, %v5412_v18 }
 0x228   : > { %v5463_v5 = vadd.f32 %v4018_v15, %v2391_v32  ;;  %v2394_v53 = vadd.f32 %v3947_v40, %v5371_v26  ;;  %v2565_v26 = vadd.f32 (!%p3492_p5), %v2564_v4, %v5392_v30  ;;  %v2634_v43 = vadd.f32 (!%p3492_p5), %v2603_v57, %v2602_v28 }
 0x229   : > { %v2609_v15 = vmul.f32 (!%p3492_p5), %v5395_v14, %v5395_v14  ;;  %v2612_v40 = vmul.f32 (!%p3492_p5), %v5403_v48, %v5403_v48  ;;  %v2614_v57 = vmul.f32 (!%p3492_p5), %v5419_v31, %v5419_v31 }
 0x22a   : > { %v5466_v8 = vadd.f32 %v4019_v35, %v2394_v53  ;;  %v2566_v0 = vadd.f32 (!%p3492_p5), %v2565_v26, %v5398_v56  ;;  %v2635_v13 = vadd.f32 (!%p3492_p5), %v2634_v43, %v2604_v1 }
 0x22c   : > { %v2567_v24 = vadd.f32 %v2566_v0, %v5389_v54  ;;  %v2636_v22 = vadd.f32 %v2635_v13, %v2605_v20  ;;  %v2615_v0 = vmul.f32 %v5424_v9, %v5424_v9  ;;  %v2617_v13 = vmul.f32 %v5421_v36, %v5421_v36 }
 0x22e   : > { %v2568_v60 = vadd.f32 %v2567_v24, %v5395_v14  ;;  %v2637_v44 = vadd.f32 %v2636_v22, %v2606_v59  ;;  %v2616_v24 = vmul.f32 %v5416_v47, %v5416_v47  ;;  %v2618_v22 = vmul.f32 %v5430_v33, %v5430_v33 }
 0x230   : > { %v2569_v41 = vadd.f32 %v2568_v60, %v5406_v12  ;;  %v2638_v6 = vadd.f32 %v2637_v44, %v2607_v38  ;;  %v2619_v44 = vmul.f32 %v5434_v17, %v5434_v17 }
 0x232   : > { %v2570_v25 = vadd.f32 %v2569_v41, %v5412_v18  ;;  %v2639_v42 = vadd.f32 %v2638_v6, %v2608_v27  ;;  %v2620_v6 = vmul.f32 %v5428_v61, %v5428_v61 }
 0x234   : > { %v2571_v10 = vadd.f32 %v2570_v25, %v5403_v48  ;;  %v2640_v21 = vadd.f32 %v2639_v42, %v2609_v15  ;;  %v2621_v42 = vmul.f32 %v5432_v39, %v5432_v39 }
 0x236   : > { %v2572_v35 = vadd.f32 %v2571_v10, %v5409_v46  ;;  %v2641_v53 = vadd.f32 %v2640_v21, %v2610_v52  ;;  %v2622_v21 = vmul.f32 %v5440_v23, %v5440_v23 }
 0x238   : > { %v2573_v32 = vadd.f32 %v2572_v35, %v5419_v31  ;;  %v2642_v4 = vadd.f32 %v2641_v53, %v2611_v34  ;;  %v2623_v53 = vmul.f32 %v5444_v37, %v5444_v37 }
 0x23a   : > { %v2574_v7 = vadd.f32 %v2573_v32, %v5424_v9  ;;  %v2643_v26 = vadd.f32 %v2642_v4, %v2612_v40  ;;  %v2624_v4 = vmul.f32 %v5438_v29, %v5438_v29 }
 0x23c   : > { %v2575_v28 = vadd.f32 %v2574_v7, %v5416_v47  ;;  %v2644_v20 = vadd.f32 %v2643_v26, %v2613_v45  ;;  %v2625_v26 = vmul.f32 %v5442_v55, %v5442_v55 }
 0x23e   : > { %v2576_v1 = vadd.f32 %v2575_v28, %v5421_v36  ;;  %v2645_v19 = vadd.f32 %v2644_v20, %v2614_v57  ;;  %v2626_v20 = vmul.f32 %v5450_v50, %v5450_v50 }
 0x240   : > { %v2577_v43 = vadd.f32 %v2576_v1, %v5430_v33  ;;  %v2646_v60 = vadd.f32 %v2645_v19, %v2615_v0  ;;  %v2627_v19 = vmul.f32 %v5454_v63, %v5454_v63 }
 0x242   : > { %v2578_v59 = vadd.f32 %v2577_v43, %v5434_v17  ;;  %v2647_v41 = vadd.f32 %v2646_v60, %v2616_v24  ;;  %v2628_v60 = vmul.f32 %v5448_v49, %v5448_v49 }
 0x244   : > { %v2579_v38 = vadd.f32 %v2578_v59, %v5428_v61  ;;  %v2648_v25 = vadd.f32 %v2647_v41, %v2617_v13  ;;  %v2629_v41 = vmul.f32 %v5452_v3, %v5452_v3 }
 0x246   : > { %v2580_v27 = vadd.f32 %v2579_v38, %v5432_v39  ;;  %v2649_v10 = vadd.f32 %v2648_v25, %v2618_v22  ;;  %v2630_v25 = vmul.f32 %v5458_v2, %v5458_v2 }
 0x248   : > { %v2581_v15 = vadd.f32 %v2580_v27, %v5440_v23  ;;  %v2650_v35 = vadd.f32 %v2649_v10, %v2619_v44  ;;  %v2631_v10 = vmul.f32 %v5461_v51, %v5461_v51 }
 0x24a   : > { %v2582_v52 = vadd.f32 %v2581_v15, %v5444_v37  ;;  %v2651_v32 = vadd.f32 %v2650_v35, %v2620_v6  ;;  %v2632_v35 = vmul.f32 %v5463_v5, %v5463_v5 }
 0x24c   : > { %v2583_v34 = vadd.f32 %v2582_v52, %v5438_v29  ;;  %v2652_v7 = vadd.f32 %v2651_v32, %v2621_v42  ;;  %v2633_v32 = vmul.f32 %v5466_v8, %v5466_v8 }
 0x24e   : > { %v2584_v40 = vadd.f32 %v2583_v34, %v5442_v55  ;;  %v2653_v28 = vadd.f32 %v2652_v7, %v2622_v21 }
 0x250   : > { %v2585_v45 = vadd.f32 %v2584_v40, %v5450_v50  ;;  %v2654_v1 = vadd.f32 %v2653_v28, %v2623_v53 }
 0x252   : > { %v2586_v57 = vadd.f32 %v2585_v45, %v5454_v63  ;;  %v2655_v43 = vadd.f32 %v2654_v1, %v2624_v4 }
 0x254   : > { %v2587_v0 = vadd.f32 %v2586_v57, %v5448_v49  ;;  %v2656_v59 = vadd.f32 %v2655_v43, %v2625_v26  ;;  %v2561_v57 = vld [vmem:[#allocation2] sm:$0x1] }
 0x256   : > { %v2588_v24 = vadd.f32 %v2587_v0, %v5452_v3  ;;  %v2657_v38 = vadd.f32 %v2656_v59, %v2626_v20  ;;  %v2601_v59 = vld [vmem:[#allocation3] sm:$0x1] }
 0x258   : > { %v2589_v13 = vadd.f32 %v2588_v24, %v5458_v2  ;;  %v2658_v27 = vadd.f32 %v2657_v38, %v2627_v19 }
 0x25a   : > { %v2590_v22 = vadd.f32 %v2589_v13, %v5461_v51  ;;  %v2659_v15 = vadd.f32 %v2658_v27, %v2628_v60 }
 0x25c   : > { %v2591_v44 = vadd.f32 %v2590_v22, %v5463_v5  ;;  %v2660_v52 = vadd.f32 %v2659_v15, %v2629_v41 }
 0x25e   : > { %v2592_v6 = vadd.f32 %v2591_v44, %v5466_v8  ;;  %v2661_v34 = vadd.f32 %v2660_v52, %v2630_v25 }
 0x260   : > { %v2593_v42 = vrot.slane %v2592_v6, 4  ;;  %v2662_v40 = vadd.f32 %v2661_v34, %v2631_v10 }
 0x262   : > { %v2594_v21 = vadd.f32 %v2593_v42, %v2592_v6  ;;  %v2663_v7 = vadd.f32 %v2662_v40, %v2632_v35 }
 0x264   : > { %v2595_v53 = vrot.slane %v2594_v21, 2  ;;  %v2664_v4 = vadd.f32 %v2663_v7, %v2633_v32 }
 0x266   : > { %v2596_v45 = vadd.f32 %v2595_v53, %v2594_v21  ;;  %v2665_v26 = vrot.slane %v2664_v4, 4 }
 0x268   : > { %v2597_v28 = vrot.slane %v2596_v45, 1  ;;  %v2666_v0 = vadd.f32 %v2665_v26, %v2664_v4 }
 0x26a   : > { %v2598_v1 = vadd.f32 %v2597_v28, %v2596_v45  ;;  %v2667_v43 = vrot.slane %v2666_v0, 2 }
 0x26c   : > { %v2599_v20 = vadd.f32 %v2598_v1, %v2561_v57  ;;  %v2668_v24 = vadd.f32 %v2667_v43, %v2666_v0 }
 0x26e   : > { %2600 = vst [vmem:[#allocation2] sm:$0x1] %v2599_v20  ;;  %v2669_v19 = vrot.slane %v2668_v24, 1 }
 0x270   : > { %v2670_v13 = vadd.f32 %v2669_v19, %v2668_v24 }
 0x272   : > { %v2671_v60 = vadd.f32 %v2670_v13, %v2601_v59 }
 0x274   : > { %2672 = vst [vmem:[#allocation3] sm:$0x1] %v2671_v60 }
 0x275 PF: > { %p3493_p6 = scmp.ne.s32.totalorder %s4369_s23, 1 }
 0x276   : > { %v2679_v38 = vld [vmem:[#allocation2] sm:$0x1] (!%p3493_p6)  ;;  %v2694_v41 = vlaneseq (!%p3493_p6) }
 0x277   : > { %2678 = sbr.rel (%p3493_p6) target bundleno = 1178 (0x49a), region = 56  ;;  %v2680_v27 = vmul.f32 (!%p3493_p6), 0.03125, %v2679_v38  ;;  %v2686_v34 = vld [vmem:[%s5802_s2] sm:$0x1] (!%p3493_p6) }
 0x278   : > { %v5572_v25 = vshrl.u32 (!%p3493_p6), %v2694_v41, 7  ;;  %v5574_v15 = vand.u32 (!%p3493_p6), 127, %v2694_v41  ;;  %v2690_v53 = vld [vmem:[%s5803_s3] sm:$0x1] (!%p3493_p6) }
 0x279   : > { %v2683_v6 = vmul.f32 (!%p3493_p6), %v2680_v27, %v2680_v27 }
 0x27a   : > { %v5578_v10 = vsub.s32 (!%p3493_p6), %v5574_v15, %v5572_v25  ;;  %v2696_v21 = vsub.s32 (!%p3493_p6), 0, %v5572_v25 }
 0x27b   : > { %v2681_v22 = vld [vmem:[#allocation3] sm:$0x1] (!%p3493_p6) }
 0x27c   : > { %v2682_v44 = vmul.f32 (!%p3493_p6), 0.03125, %v2681_v22 }
 0x27e   : > { %v2684_v52 = vsub.f32 %v2682_v44, %v2683_v6 }
 0x280   : > { %v2685_v42 = vmax.f32 %v2684_v52, 0.0 }
 0x282   : > { %v2687_v35 = vadd.f32 1e-05, %v2685_v42 }
 0x284   : > { %4345 = vrsqrt.f32 %v2687_v35 }
 0x28e   : > { %v4346_v32 = vpop.eup %4345 }
 0x28f   : > { %v2689_v40 = vmul.f32 %v4346_v32, %v2686_v34 }
 0x291   : > { %v2691_v7 = vmul.f32 %v2689_v40, %v2680_v27  ;;  %v5587_v45 = vrot.slane %v2689_v40, %v2696_v21 }
 0x293   : > { %v2692_v4 = vsub.f32 %v2690_v53, %v2691_v7  ;;  %v2701_v28 = vmul.f32 %v5587_v45, %v5375_v16  ;;  %v2699_v57 = vmul.f32 %v5587_v45, %v5378_v11  ;;  %v2702_v26 = vmul.f32 %v5587_v45, %v5381_v58 }
 0x294   : > { %v2700_v1 = vmul.f32 %v5587_v45, %v5384_v62  ;;  %v2716_v0 = vmul.f32 %v5587_v45, %v5434_v17  ;;  %v2715_v20 = vmul.f32 %v5587_v45, %v5430_v33  ;;  %v2718_v43 = vmul.f32 %v5587_v45, %v5432_v39 }
 0x295   : > { %v5603_v24 = vrot.slane %v2692_v4, %v2696_v21  ;;  %v2717_v16 = vmul.f32 %v5587_v45, %v5428_v61  ;;  %v2704_v11 = vmul.f32 %v5587_v45, %v5398_v56  ;;  %v2703_v58 = vmul.f32 %v5587_v45, %v5392_v30  ;;  %v5620_v61 = vld [vmem:[%s5804_s4] sm:$0xff]  ;;  %v5625_v30 = vld [vmem:[%s5804_s4 + $0x8] sm:$0xff] }
 0x296   : > { %v2720_v62 = vmul.f32 %v5587_v45, %v5444_v37  ;;  %v2719_v40 = vmul.f32 %v5587_v45, %v5440_v23  ;;  %v2706_v23 = vmul.f32 %v5587_v45, %v5395_v14 }
 0x297   : > { %v2739_v17 = vadd.f32 %v5603_v24, %v2701_v28  ;;  %v2737_v33 = vadd.f32 %v5603_v24, %v2699_v57  ;;  %v2740_v39 = vadd.f32 %v5603_v24, %v2702_v26  ;;  %v2738_v19 = vadd.f32 %v5603_v24, %v2700_v1 }
 0x298   : > { %v2754_v56 = vadd.f32 %v5603_v24, %v2716_v0  ;;  %v2753_v37 = vadd.f32 %v5603_v24, %v2715_v20  ;;  %v2756_v59 = vadd.f32 %v5603_v24, %v2718_v43  ;;  %v2755_v13 = vadd.f32 %v5603_v24, %v2717_v16 }
 0x299   : > { %vm2771_vm0 = vcmp.ge.f32.partialorder %v2739_v17, 0.0  ;;  %v2803_v60 = vmul.f32 0.2, %v2739_v17  ;;  %vm2769_vm1 = vcmp.ge.f32.partialorder %v2737_v33, 0.0  ;;  %v2801_v38 = vmul.f32 0.2, %v2737_v33 }
 0x29a   : > { %vm2772_vm2 = vcmp.ge.f32.partialorder %v2740_v39, 0.0  ;;  %v2804_v22 = vmul.f32 0.2, %v2740_v39  ;;  %vm2770_vm3 = vcmp.ge.f32.partialorder %v2738_v19, 0.0  ;;  %v2802_v41 = vmul.f32 0.2, %v2738_v19 }
 0x29b   : > { %v2835_v27 = vsel %vm2771_vm0, %v2739_v17, %v2803_v60  ;;  %v2833_v44 = vsel %vm2769_vm1, %v2737_v33, %v2801_v38  ;;  %vm2786_vm4 = vcmp.ge.f32.partialorder %v2754_v56, 0.0  ;;  %v2818_v6 = vmul.f32 0.2, %v2754_v56 }
 0x29c   : > { %v2869_v52 = vmul.f32 %v5620_v61, %v2835_v27  ;;  %v2867_v42 = vmul.f32 %v5620_v61, %v2833_v44  ;;  %v2836_v35 = vsel %vm2772_vm2, %v2740_v39, %v2804_v22  ;;  %v2834_v34 = vsel %vm2770_vm3, %v2738_v19, %v2802_v41 }
 0x29d   : > { %v2870_v21 = vmul.f32 %v5625_v30, %v2836_v35  ;;  %v2868_v32 = vmul.f32 %v5625_v30, %v2834_v34  ;;  %vm2785_vm5 = vcmp.ge.f32.partialorder %v2753_v37, 0.0  ;;  %v2850_v53 = vsel %vm2786_vm4, %v2754_v56, %v2818_v6 }
 0x29e   : > { %2903 = vadd.xlane.f32.xlu1 %v2869_v52  ;;  %2899 = vadd.xlane.f32.xlu0 %v2867_v42  ;;  %v2817_v7 = vmul.f32 0.2, %v2753_v37  ;;  %vm2788_vm6 = vcmp.ge.f32.partialorder %v2756_v59, 0.0  ;;  %v2820_v4 = vmul.f32 0.2, %v2756_v59  ;;  %vm2787_vm7 = vcmp.ge.f32.partialorder %v2755_v13, 0.0 }
 0x29f   : > { %v2819_v28 = vmul.f32 0.2, %v2755_v13  ;;  %v2742_v57 = vadd.f32 %v5603_v24, %v2704_v11  ;;  %v2741_v26 = vadd.f32 %v5603_v24, %v2703_v58  ;;  %v2884_v0 = vmul.f32 %v5625_v30, %v2850_v53 }
 0x2a0   : > { %v2849_v1 = vsel %vm2785_vm5, %v2753_v37, %v2817_v7  ;;  %v2852_v20 = vsel %vm2788_vm6, %v2756_v59, %v2820_v4  ;;  %v2758_v43 = vadd.f32 %v5603_v24, %v2720_v62  ;;  %v2757_v39 = vadd.f32 %v5603_v24, %v2719_v40 }
 0x2a1   : > { %v2883_v16 = vmul.f32 %v5620_v61, %v2849_v1  ;;  %v2851_v17 = vsel %vm2787_vm7, %v2755_v13, %v2819_v28  ;;  %v2806_v33 = vmul.f32 0.2, %v2742_v57  ;;  %vm2774_vm8 = vcmp.ge.f32.partialorder %v2742_v57, 0.0 }
 0x2a2   : > { %2905 = vadd.xlane.f32.xlu1 %v2870_v21  ;;  %2901 = vadd.xlane.f32.xlu0 %v2868_v32  ;;  %v2805_v11 = vmul.f32 0.2, %v2741_v26  ;;  %v2705_v58 = vmul.f32 %v5587_v45, %v5389_v54  ;;  %vm2773_vm9 = vcmp.ge.f32.partialorder %v2741_v26, 0.0  ;;  %v2886_v19 = vmul.f32 %v5625_v30, %v2852_v20 }
 0x2a3   : > { %v2885_v62 = vmul.f32 %v5620_v61, %v2851_v17  ;;  %vm2790_vm10 = vcmp.ge.f32.partialorder %v2758_v43, 0.0  ;;  %v2822_v14 = vmul.f32 0.2, %v2758_v43  ;;  %v2838_v56 = vsel %vm2774_vm8, %v2742_v57, %v2806_v33 }
 0x2a4   : > { %vm2789_vm11 = vcmp.ge.f32.partialorder %v2757_v39, 0.0  ;;  %v2821_v37 = vmul.f32 0.2, %v2757_v39  ;;  %v2744_v59 = vadd.f32 %v5603_v24, %v2706_v23  ;;  %v2837_v13 = vsel %vm2773_vm9, %v2741_v26, %v2805_v11 }
 0x2a5   : > { %v2743_v60 = vadd.f32 %v5603_v24, %v2705_v58  ;;  %v2722_v54 = vmul.f32 %v5587_v45, %v5442_v55  ;;  %v2721_v38 = vmul.f32 %v5587_v45, %v5438_v29  ;;  %v2708_v22 = vmul.f32 %v5587_v45, %v5412_v18 }
 0x2a6   : > { %2933 = vadd.xlane.f32.xlu1 %v2884_v0  ;;  %2931 = vadd.xlane.f32.xlu0 %v2883_v16  ;;  %v2707_v41 = vmul.f32 %v5587_v45, %v5406_v12  ;;  %v2872_v27 = vmul.f32 %v5625_v30, %v2838_v56  ;;  %v2871_v44 = vmul.f32 %v5620_v61, %v2837_v13  ;;  %v2808_v42 = vmul.f32 0.2, %v2744_v59 }
 0x2a7   : > { %v2854_v6 = vsel %vm2790_vm10, %v2758_v43, %v2822_v14  ;;  %v2853_v52 = vsel %vm2789_vm11, %v2757_v39, %v2821_v37  ;;  %vm2776_vm12 = vcmp.ge.f32.partialorder %v2744_v59, 0.0  ;;  %v2807_v55 = vmul.f32 0.2, %v2743_v60 }
 0x2a8   : > { %v2760_v29 = vadd.f32 %v5603_v24, %v2722_v54  ;;  %v2759_v35 = vadd.f32 %v5603_v24, %v2721_v38  ;;  %vm2775_vm13 = vcmp.ge.f32.partialorder %v2743_v60, 0.0  ;;  %v2746_v18 = vadd.f32 %v5603_v24, %v2708_v22 }
 0x2a9   : > { %v2745_v12 = vadd.f32 %v5603_v24, %v2707_v41  ;;  %v2724_v34 = vmul.f32 %v5587_v45, %v5454_v63  ;;  %v2888_v21 = vmul.f32 %v5625_v30, %v2854_v6  ;;  %v2887_v32 = vmul.f32 %v5620_v61, %v2853_v52 }
 0x2aa   : > { %2937 = vadd.xlane.f32.xlu1 %v2886_v19  ;;  %2935 = vadd.xlane.f32.xlu0 %v2885_v62  ;;  %v2840_v40 = vsel %vm2776_vm12, %v2744_v59, %v2808_v42  ;;  %v2723_v53 = vmul.f32 %v5587_v45, %v5450_v50  ;;  %v2839_v7 = vsel %vm2775_vm13, %v2743_v60, %v2807_v55  ;;  %vm2792_vm14 = vcmp.ge.f32.partialorder %v2760_v29, 0.0 }
 0x2ab   : > { %v2824_v4 = vmul.f32 0.2, %v2760_v29  ;;  %v2823_v28 = vmul.f32 0.2, %v2759_v35  ;;  %vm2791_vm15 = vcmp.ge.f32.partialorder %v2759_v35, 0.0  ;;  %v2762_v1 = vadd.f32 %v5603_v24, %v2724_v34 }
 0x2ac   : > { %v2810_v57 = vmul.f32 0.2, %v2746_v18  ;;  %v2809_v26 = vmul.f32 0.2, %v2745_v12  ;;  %v2874_v63 = vmul.f32 %v5625_v30, %v2840_v40  ;;  %vm2778_vm0 = vcmp.ge.f32.partialorder %v2746_v18, 0.0 }
 0x2ad   : > { %vm2777_vm1 = vcmp.ge.f32.partialorder %v2745_v12, 0.0  ;;  %v2710_v0 = vmul.f32 %v5587_v45, %v5409_v46  ;;  %v2873_v50 = vmul.f32 %v5620_v61, %v2839_v7  ;;  %v2761_v20 = vadd.f32 %v5603_v24, %v2723_v53 }
 0x2ae   : > { %2909 = vadd.xlane.f32.xlu1 %v2872_v27  ;;  %2907 = vadd.xlane.f32.xlu0 %v2871_v44  ;;  %v2709_v43 = vmul.f32 %v5587_v45, %v5403_v48  ;;  %v2856_v23 = vsel %vm2792_vm14, %v2760_v29, %v2824_v4  ;;  %v2855_v16 = vsel %vm2791_vm15, %v2759_v35, %v2823_v28  ;;  %v2826_v39 = vmul.f32 0.2, %v2762_v1 }
 0x2af   : > { %v2842_v17 = vsel %vm2778_vm0, %v2746_v18, %v2810_v57  ;;  %v2841_v33 = vsel %vm2777_vm1, %v2745_v12, %v2809_v26  ;;  %vm2794_vm2 = vcmp.ge.f32.partialorder %v2762_v1, 0.0  ;;  %v2748_v11 = vadd.f32 %v5603_v24, %v2710_v0 }
 0x2b0   : > { %v2726_v46 = vmul.f32 %v5587_v45, %v5452_v3  ;;  %v2725_v58 = vmul.f32 %v5587_v45, %v5448_v49  ;;  %v2890_v19 = vmul.f32 %v5625_v30, %v2856_v23  ;;  %v2889_v48 = vmul.f32 %v5620_v61, %v2855_v16 }
 0x2b1   : > { %v2825_v62 = vmul.f32 0.2, %v2761_v20  ;;  %v2747_v14 = vadd.f32 %v5603_v24, %v2709_v43  ;;  %vm2793_vm3 = vcmp.ge.f32.partialorder %v2761_v20, 0.0  ;;  %v2876_v56 = vmul.f32 %v5625_v30, %v2842_v17 }
 0x2b2   : > { %2941 = vadd.xlane.f32.xlu1 %v2888_v21  ;;  %2939 = vadd.xlane.f32.xlu0 %v2887_v32  ;;  %v2875_v37 = vmul.f32 %v5620_v61, %v2841_v33  ;;  %v2858_v59 = vsel %vm2794_vm2, %v2762_v1, %v2826_v39  ;;  %v3001_v3 = vadd.s32 4294967288, %v5574_v15  ;;  %v2812_v13 = vmul.f32 0.2, %v2748_v11 }
 0x2b3   : > { %v2764_v49 = vadd.f32 %v5603_v24, %v2726_v46  ;;  %v2763_v60 = vadd.f32 %v5603_v24, %v2725_v58  ;;  %v2712_v54 = vmul.f32 %v5587_v45, %v5424_v9  ;;  %v2857_v38 = vsel %vm2793_vm3, %v2761_v20, %v2825_v62 }
 0x2b4   : > { %vm2780_vm4 = vcmp.ge.f32.partialorder %v2748_v11, 0.0  ;;  %v2811_v22 = vmul.f32 0.2, %v2747_v14  ;;  %v2711_v41 = vmul.f32 %v5587_v45, %v5419_v31  ;;  %vm2779_vm5 = vcmp.ge.f32.partialorder %v2747_v14, 0.0 }
 0x2b5   : > { %v2892_v27 = vmul.f32 %v5625_v30, %v2858_v59  ;;  %v5700_v15 = vsub.s32 %v3001_v3, %v5572_v25  ;;  %v2891_v44 = vmul.f32 %v5620_v61, %v2857_v38  ;;  %v2844_v6 = vsel %vm2780_vm4, %v2748_v11, %v2812_v13 }
 0x2b6   : > { %2913 = vadd.xlane.f32.xlu1 %v2874_v63  ;;  %2911 = vadd.xlane.f32.xlu0 %v2873_v50  ;;  %v2828_v52 = vmul.f32 0.2, %v2764_v49  ;;  %v2750_v9 = vadd.f32 %v5603_v24, %v2712_v54  ;;  %v2843_v42 = vsel %vm2779_vm5, %v2747_v14, %v2811_v22  ;;  %v2827_v55 = vmul.f32 0.2, %v2763_v60 }
 0x2b7   : > { %v2749_v29 = vadd.f32 %v5603_v24, %v2711_v41  ;;  %v2728_v31 = vmul.f32 %v5587_v45, %v5461_v51  ;;  %vm2796_vm6 = vcmp.ge.f32.partialorder %v2764_v49, 0.0  ;;  %vm2795_vm7 = vcmp.ge.f32.partialorder %v2763_v60, 0.0 }
 0x2b8   : > { %v2727_v25 = vmul.f32 %v5587_v45, %v5458_v2  ;;  %v2878_v35 = vmul.f32 %v5625_v30, %v2844_v6  ;;  %v2877_v18 = vmul.f32 %v5620_v61, %v2843_v42  ;;  %vm2782_vm8 = vcmp.ge.f32.partialorder %v2750_v9, 0.0 }
 0x2b9   : > { %v2814_v12 = vmul.f32 0.2, %v2750_v9  ;;  %v2860_v34 = vsel %vm2796_vm6, %v2764_v49, %v2828_v52  ;;  %v2859_v21 = vsel %vm2795_vm7, %v2763_v60, %v2827_v55  ;;  %v2813_v32 = vmul.f32 0.2, %v2749_v29 }
 0x2ba   : > { %2945 = vadd.xlane.f32.xlu1 %v2890_v19  ;;  %2943 = vadd.xlane.f32.xlu0 %v2889_v48  ;;  %v2766_v40 = vadd.f32 %v5603_v24, %v2728_v31  ;;  %vm2781_vm9 = vcmp.ge.f32.partialorder %v2749_v29, 0.0  ;;  %v2765_v51 = vadd.f32 %v5603_v24, %v2727_v25  ;;  %v2714_v53 = vmul.f32 %v5587_v45, %v5421_v36 }
 0x2bb   : > { %v2713_v2 = vmul.f32 %v5587_v45, %v5416_v47  ;;  %v2894_v7 = vmul.f32 %v5625_v30, %v2860_v34  ;;  %v2893_v4 = vmul.f32 %v5620_v61, %v2859_v21  ;;  %v2846_v28 = vsel %vm2782_vm8, %v2750_v9, %v2814_v12 }
 0x2bc   : > { %v2845_v57 = vsel %vm2781_vm9, %v2749_v29, %v2813_v32  ;;  %v2830_v26 = vmul.f32 0.2, %v2766_v40  ;;  %v2730_v1 = vmul.f32 %v5587_v45, %v5466_v8  ;;  %v2729_v63 = vmul.f32 %v5587_v45, %v5463_v5 }
 0x2bd   : > { %vm2798_vm10 = vcmp.ge.f32.partialorder %v2766_v40, 0.0  ;;  %v2829_v36 = vmul.f32 0.2, %v2765_v51  ;;  %v2752_v0 = vadd.f32 %v5603_v24, %v2714_v53  ;;  %v2751_v47 = vadd.f32 %v5603_v24, %v2713_v2 }
 0x2be   : > { %2917 = vadd.xlane.f32.xlu1 %v2876_v56  ;;  %2915 = vadd.xlane.f32.xlu0 %v2875_v37  ;;  %vm2797_vm11 = vcmp.ge.f32.partialorder %v2765_v51, 0.0  ;;  %v2880_v50 = vmul.f32 %v5625_v30, %v2846_v28  ;;  %v2879_v20 = vmul.f32 %v5620_v61, %v2845_v57  ;;  %v2862_v43 = vsel %vm2798_vm10, %v2766_v40, %v2830_v26 }
 0x2bf   : > { %v2768_v23 = vadd.f32 %v5603_v24, %v2730_v1  ;;  %v2861_v8 = vsel %vm2797_vm11, %v2765_v51, %v2829_v36  ;;  %v2816_v16 = vmul.f32 0.2, %v2752_v0  ;;  %v2815_v17 = vmul.f32 0.2, %v2751_v47 }
 0x2c0   : > { %v2767_v5 = vadd.f32 %v5603_v24, %v2729_v63  ;;  %vm2784_vm12 = vcmp.ge.f32.partialorder %v2752_v0, 0.0  ;;  %vm2783_vm13 = vcmp.ge.f32.partialorder %v2751_v47, 0.0  ;;  %v2896_v45 = vmul.f32 %v5625_v30, %v2862_v43 }
 0x2c1   : > { %v2895_v33 = vmul.f32 %v5620_v61, %v2861_v8  ;;  %v2848_v39 = vsel %vm2784_vm12, %v2752_v0, %v2816_v16  ;;  %v2847_v11 = vsel %vm2783_vm13, %v2751_v47, %v2815_v17  ;;  %v2832_v46 = vmul.f32 0.2, %v2768_v23 }
 0x2c2   : > { %2949 = vadd.xlane.f32.xlu1 %v2892_v27  ;;  %2947 = vadd.xlane.f32.xlu0 %v2891_v44  ;;  %v2831_v58 = vmul.f32 0.2, %v2767_v5  ;;  %vm2800_vm14 = vcmp.ge.f32.partialorder %v2768_v23, 0.0  ;;  %vm2799_vm15 = vcmp.ge.f32.partialorder %v2767_v5, 0.0  ;;  %v2882_v19 = vmul.f32 %v5625_v30, %v2848_v39 }
 0x2c3   : > { %v2881_v24 = vmul.f32 %v5620_v61, %v2847_v11  ;;  %v2864_v48 = vsel %vm2800_vm14, %v2768_v23, %v2832_v46  ;;  %vm3006_vm0 = vcmask 130112   ;;  %vm3143_vm1 = vcmask 1041409  }
 0x2c4   : > { %v2863_v62 = vsel %vm2799_vm15, %v2767_v5, %v2831_v58  ;;  %v2898_v14 = vmul.f32 %v5625_v30, %v2864_v48  ;;  %vm3145_vm2 = vcmask 1042434   ;;  %vm3147_vm3 = vcmask 1043459  }
 0x2c5   : > { %v2897_v56 = vmul.f32 %v5620_v61, %v2863_v62  ;;  %vm3149_vm4 = vcmask 1044484   ;;  %vm3151_vm5 = vcmask 1045509   ;;  %vm3153_vm6 = vcmask 1046534  }
 0x2c6   : > { %2921 = vadd.xlane.f32.xlu1 %v2878_v35  ;;  %2919 = vadd.xlane.f32.xlu0 %v2877_v18  ;;  %vm3155_vm7 = vcmask 1047559   ;;  %vm3166_vm8 = vcmask 130048  }
 0x2ca   : > { %2953 = vadd.xlane.f32.xlu1 %v2894_v7  ;;  %2951 = vadd.xlane.f32.xlu0 %v2893_v4 }
 0x2ce   : > { %2925 = vadd.xlane.f32.xlu1 %v2880_v50  ;;  %2923 = vadd.xlane.f32.xlu0 %v2879_v20 }
 0x2d2   : > { %2957 = vadd.xlane.f32.xlu1 %v2896_v45  ;;  %2955 = vadd.xlane.f32.xlu0 %v2895_v33 }
 0x2d6   : > { %2929 = vadd.xlane.f32.xlu1 %v2882_v19  ;;  %2927 = vadd.xlane.f32.xlu0 %v2881_v24 }
 0x2da   : > { %2961 = vadd.xlane.f32.xlu1 %v2898_v14  ;;  %2959 = vadd.xlane.f32.xlu0 %v2897_v56 }
 0x32b   : > { %v2904_v37 = vpop.xlane.xlu1 %2903  ;;  %v2900_v59 = vpop.xlane.xlu0 %2899 }
 0x32c   : > { %v3011_v49 = vrot.slane %v2904_v37, %v5578_v10  ;;  %v3000_v60 = vrot.slane %v2900_v59, %v5578_v10 }
 0x32f   : > { %v2906_v3 = vpop.xlane.xlu1 %2905  ;;  %v2902_v13 = vpop.xlane.xlu0 %2901 }
 0x330   : > { %v3015_v54 = vrot.slane %v2906_v3, %v5700_v15  ;;  %v3005_v38 = vrot.slane %v2902_v13, %v5700_v15 }
 0x332   : > { %v3016_v30 = vsel %vm3006_vm0, %v3015_v54, %v3011_v49  ;;  %v3007_v61 = vsel %vm3006_vm0, %v3005_v38, %v3000_v60 }
 0x333   : > { %v3144_v22 = vsel %vm3143_vm1, %v3016_v30, %v3007_v61  ;;  %v2934_v41 = vpop.xlane.xlu1 %2933  ;;  %v2932_v27 = vpop.xlane.xlu0 %2931 }
 0x334   : > { %v3078_v44 = vrot.slane %v2934_v41, %v5700_v15  ;;  %v3074_v6 = vrot.slane %v2932_v27, %v5578_v10 }
 0x336   : > { %v3079_v52 = vsel %vm3006_vm0, %v3078_v44, %v3074_v6 }
 0x337   : > { %v2938_v9 = vpop.xlane.xlu1 %2937  ;;  %v2936_v42 = vpop.xlane.xlu0 %2935 }
 0x338   : > { %v3087_v55 = vrot.slane %v2938_v9, %v5700_v15  ;;  %v3083_v29 = vrot.slane %v2936_v42, %v5578_v10 }
 0x33a   : > { %v3088_v31 = vsel %vm3006_vm0, %v3087_v55, %v3083_v29 }
 0x33b   : > { %v3157_v25 = vsel %vm3143_vm1, %v3088_v31, %v3079_v52  ;;  %v2910_v35 = vpop.xlane.xlu1 %2909  ;;  %v2908_v18 = vpop.xlane.xlu0 %2907 }
 0x33c   : > { %v3024_v12 = vrot.slane %v2910_v35, %v5700_v15  ;;  %v3020_v34 = vrot.slane %v2908_v18, %v5578_v10 }
 0x33e   : > { %v3025_v21 = vsel %vm3006_vm0, %v3024_v12, %v3020_v34 }
 0x33f   : > { %v3146_v32 = vsel %vm3145_vm2, %v3025_v21, %v3144_v22  ;;  %v2942_v40 = vpop.xlane.xlu1 %2941  ;;  %v2940_v51 = vpop.xlane.xlu0 %2939 }
 0x340   : > { %v3096_v53 = vrot.slane %v2942_v40, %v5700_v15  ;;  %v3092_v2 = vrot.slane %v2940_v51, %v5578_v10 }
 0x342   : > { %v3097_v7 = vsel %vm3006_vm0, %v3096_v53, %v3092_v2 }
 0x343   : > { %v3158_v4 = vsel %vm3145_vm2, %v3097_v7, %v3157_v25  ;;  %v2914_v28 = vpop.xlane.xlu1 %2913  ;;  %v2912_v57 = vpop.xlane.xlu0 %2911 }
 0x344   : > { %v3033_v26 = vrot.slane %v2914_v28, %v5700_v15  ;;  %v3029_v1 = vrot.slane %v2912_v57, %v5578_v10  ;;  %v4381_v28 = vmov 0   ;;  %v3494_v57 = vld [vmem:[#allocation4] ss:$0 sm:$0xff] }
 0x345   : > { %4343 = vset.pattern.permute.xlu0 %v4381_v28  ;;  %4344 = vset.pattern.permute.xlu1 %v4381_v28 }
 0x346   : > { %v3034_v63 = vsel %vm3006_vm0, %v3033_v26, %v3029_v1 }
 0x347   : > { %v3148_v36 = vsel %vm3147_vm3, %v3034_v63, %v3146_v32  ;;  %v2946_v0 = vpop.xlane.xlu1 %2945  ;;  %v2944_v47 = vpop.xlane.xlu0 %2943 }
 0x348   : > { %v3105_v50 = vrot.slane %v2946_v0, %v5700_v15  ;;  %v3101_v20 = vrot.slane %v2944_v47, %v5578_v10 }
 0x34a   : > { %v3106_v43 = vsel %vm3006_vm0, %v3105_v50, %v3101_v20 }
 0x34b   : > { %v3159_v23 = vsel %vm3147_vm3, %v3106_v43, %v3158_v4  ;;  %v2918_v8 = vpop.xlane.xlu1 %2917  ;;  %v2916_v16 = vpop.xlane.xlu0 %2915 }
 0x34c   : > { %v3042_v17 = vrot.slane %v2918_v8, %v5700_v15  ;;  %v3038_v5 = vrot.slane %v2916_v16, %v5578_v10 }
 0x34e   : > { %v3043_v45 = vsel %vm3006_vm0, %v3042_v17, %v3038_v5 }
 0x34f   : > { %v3150_v33 = vsel %vm3149_vm4, %v3043_v45, %v3148_v36  ;;  %v2950_v39 = vpop.xlane.xlu1 %2949  ;;  %v2948_v11 = vpop.xlane.xlu0 %2947 }
 0x350   : > { %v3114_v46 = vrot.slane %v2950_v39, %v5700_v15  ;;  %v3110_v58 = vrot.slane %v2948_v11, %v5578_v10 }
 0x352   : > { %v3115_v19 = vsel %vm3006_vm0, %v3114_v46, %v3110_v58 }
 0x353   : > { %v3160_v24 = vsel %vm3149_vm4, %v3115_v19, %v3159_v23  ;;  %v2922_v48 = vpop.xlane.xlu1 %2921  ;;  %v2920_v62 = vpop.xlane.xlu0 %2919 }
 0x354   : > { %v3051_v14 = vrot.slane %v2922_v48, %v5700_v15  ;;  %v3047_v56 = vrot.slane %v2920_v62, %v5578_v10 }
 0x356   : > { %v3052_v37 = vsel %vm3006_vm0, %v3051_v14, %v3047_v56 }
 0x357   : > { %v2954_v59 = vpop.xlane.xlu1 %2953  ;;  %v2952_v3 = vpop.xlane.xlu0 %2951  ;;  %v3152_v13 = vsel %vm3151_vm5, %v3052_v37, %v3150_v33 }
 0x358   : > { %v3123_v49 = vrot.slane %v2954_v59, %v5700_v15  ;;  %v3119_v60 = vrot.slane %v2952_v3, %v5578_v10 }
 0x35a   : > { %v3124_v54 = vsel %vm3006_vm0, %v3123_v49, %v3119_v60 }
 0x35b   : > { %v2926_v38 = vpop.xlane.xlu1 %2925  ;;  %v2924_v30 = vpop.xlane.xlu0 %2923  ;;  %v3161_v61 = vsel %vm3151_vm5, %v3124_v54, %v3160_v24 }
 0x35c   : > { %v3060_v22 = vrot.slane %v2926_v38, %v5700_v15  ;;  %v3056_v41 = vrot.slane %v2924_v30, %v5578_v10 }
 0x35e   : > { %v3061_v27 = vsel %vm3006_vm0, %v3060_v22, %v3056_v41 }
 0x35f   : > { %v2958_v44 = vpop.xlane.xlu1 %2957  ;;  %v2956_v6 = vpop.xlane.xlu0 %2955  ;;  %v3154_v52 = vsel %vm3153_vm6, %v3061_v27, %v3152_v13 }
 0x360   : > { %v3132_v9 = vrot.slane %v2958_v44, %v5700_v15  ;;  %v3128_v42 = vrot.slane %v2956_v6, %v5578_v10 }
 0x362   : > { %v3133_v55 = vsel %vm3006_vm0, %v3132_v9, %v3128_v42 }
 0x363   : > { %v2930_v29 = vpop.xlane.xlu1 %2929  ;;  %v2928_v31 = vpop.xlane.xlu0 %2927  ;;  %v3162_v25 = vsel %vm3153_vm6, %v3133_v55, %v3161_v61 }
 0x364   : > { %v3069_v35 = vrot.slane %v2930_v29, %v5700_v15  ;;  %v3065_v18 = vrot.slane %v2928_v31, %v5578_v10 }
 0x366   : > { %v3070_v12 = vsel %vm3006_vm0, %v3069_v35, %v3065_v18 }
 0x367   : > { %v2962_v34 = vpop.xlane.xlu1 %2961  ;;  %v2960_v21 = vpop.xlane.xlu0 %2959  ;;  %v3156_v32 = vsel %vm3155_vm7, %v3070_v12, %v3154_v52 }
 0x368   : > { %v3141_v40 = vrot.slane %v2962_v34, %v5700_v15  ;;  %v3137_v51 = vrot.slane %v2960_v21, %v5578_v10  ;;  %v3167_v53 = vsel %vm3166_vm8, %v3156_v32, 0.0 }
 0x369   : > { %3168 = vadd.xlane.f32.xlu0 %v3167_v53 }
 0x36a   : > { %v3142_v2 = vsel %vm3006_vm0, %v3141_v40, %v3137_v51 }
 0x36b   : > { %v3163_v7 = vsel %vm3155_vm7, %v3142_v2, %v3162_v25 }
 0x36c   : > { %v3170_v4 = vsel %vm3166_vm8, %v3163_v7, 0.0 }
 0x36d   : > { %3171 = vadd.xlane.f32.xlu1 %v3170_v4 }
 0x3f6   : > { %v3169_v26 = vpop.xlane.xlu0 %3168 }
 0x3f7   : > { %v3180_v1 = vadd.f32 %v3494_v57, %v3169_v26 }
 0x3f9   : > { %v3182_v63 = vsub.f32 0.0, %v3180_v1 }
 0x3fa   : > { %v3172_v36 = vpop.xlane.xlu1 %3171 }
 0x3fb   : > { %v3184_v0 = vmul.f32 1.442695, %v3182_v63  ;;  %v3181_v47 = vadd.f32 %v3494_v57, %v3172_v36 }
 0x3fd   : > { %4347 = vpow2.f32 %v3184_v0  ;;  %v3183_v15 = vsub.f32 0.0, %v3181_v47 }
 0x3ff   : > { %v3186_v10 = vmul.f32 1.442695, %v3183_v15 }
 0x401   : > { %4349 = vpow2.f32 %v3186_v10 }
 0x407   : > { %v4348_v50 = vpop.eup %4347 }
 0x408   : > { %v3188_v20 = vadd.f32 1.0, %v4348_v50 }
 0x40a   : > { %4351 = vrcp.f32 %v3188_v20 }
 0x40b   : > { %v4350_v43 = vpop.eup %4349 }
 0x40c   : > { %v3189_v23 = vadd.f32 1.0, %v4350_v43 }
 0x40e   : > { %4353 = vrcp.f32 %v3189_v23 }
 0x414   : > { %v4352_v8 = vpop.eup %4351 }
 0x415   : > { %3196 = vperm.xlu0 %4343, %v4352_v8  }
 0x418   : > { %v4354_v16 = vpop.eup %4353 }
 0x419   : > { %3201 = vperm.xlu1 %4344, %v4354_v16  }
 0x494   : > { %v3197_v17 = vpop.permute.xlu0 %3196 }
 0x495   : > { %3204 = vst [vmem:[%s5806_s6] sm:$0xff] %v3197_v17 }
 0x498   : > { %v3202_v5 = vpop.permute.xlu1 %3201 }
 0x499   : > { %3205 = vst [vmem:[%s5806_s6 + $0x8] sm:$0xff] %v3202_v5 }
 0x49a PF: > { %s18_s25 = sadd.s32 1, %s4377_s25   ;;  %s5807_s23 = smov %s4373_s24 }
 0x49b   : > { %p15_p7 = scmp.ge.s32.totalorder %s18_s25, 4   ;;  %s5808_s24 = smov %s5810_s5 }
 0x49d   :  { %17 = sbr.rel (!%p15_p7) target bundleno = 3 (0x3), region = 86 }

</bundles_post_ra>
